<compile_context>
chip_gen: v6e
topology: v6e:2x2x1
jax: 0.10.0
libtpu: 0.0.40
codegen_flags: <defaults>
</compile_context>

<pallas_src>
import functools

import jax
import jax.numpy as jnp
from jax import lax
from jax.experimental import pallas as pl
from jax.experimental.pallas import tpu as pltpu


def _round_up(x, m):
    return ((x + m - 1) // m) * m


def _vmem_cap_bytes():
    """Physical VMEM per TensorCore, with a conservative fallback."""
    try:
        return int(pltpu.get_tpu_info().vmem_capacity_bytes)
    except Exception:
        return 64 * 1024 * 1024  # v7x per-TC size; safe lower bound everywhere


def _make_mf_kernel(tb, num, dim, table_dtype):
    table_dtype = jnp.dtype(table_dtype)
    # Full-fp32 MXU contraction for f32 tables; bf16 tables use the native bf16
    # MXU path (exact for a 0/1 one-hot operand) with f32 accumulation.
    gather_prec = (lax.Precision.HIGHEST
                   if table_dtype == jnp.dtype(jnp.float32) else None)

    def kernel(a_idx_ref, b_idx_ref, a_tab_ref, b_tab_ref, o_ref):
        # a_idx_ref / b_idx_ref : (tb, 1) int32 id blocks for this batch tile
        # a_tab_ref / b_tab_ref : (num, dim) VMEM-resident embedding tables
        # o_ref                 : (1, tb) lane-dense output block
        ids_a = a_idx_ref[...]                                   # (tb, 1)
        ids_b = b_idx_ref[...]
        col = lax.broadcasted_iota(jnp.int32, (tb, num), 1)      # lane iota

        # Vectorized gather via one-hot MXU matmul (no per-row scalar copies).
        onehot_a = (ids_a == col).astype(table_dtype)            # (tb, num)
        onehot_b = (ids_b == col).astype(table_dtype)
        a_rows = lax.dot_general(
            onehot_a, a_tab_ref[...],
            dimension_numbers=(((1,), (0,)), ((), ())),
            precision=gather_prec,
            preferred_element_type=jnp.float32)                  # (tb, dim) f32
        b_rows = lax.dot_general(
            onehot_b, b_tab_ref[...],
            dimension_numbers=(((1,), (0,)), ((), ())),
            precision=gather_prec,
            preferred_element_type=jnp.float32)

        prod = a_rows * b_rows                                   # VPU, f32

        # Row-sum via ones-vector MXU reduction -> lane-dense (1, tb) block
        # (no XLU transpose, no masked (tb, 1) stores).
        ones = jnp.ones((1, dim), jnp.float32)
        o_ref[...] = lax.dot_general(
            ones, prod,
            dimension_numbers=(((1,), (1,)), ((), ())),
            precision=lax.Precision.HIGHEST,
            preferred_element_type=jnp.float32)

    return kernel


@functools.partial(jax.jit, static_argnames=("tb",))
def matrix_factorization_forward(A, B, a_idx, b_idx, *, tb=None):
    """Pallas equivalent of (A[a_idx] * B[b_idx]).sum(axis=1)."""
    num, dim = A.shape
    assert B.shape == (num, dim), "A and B must share (num, dim)"
    batch = a_idx.shape[0]
    assert b_idx.shape[0] == batch

    if batch == 0:
        return jnp.zeros((0,), jnp.float32)

    if tb is None:
        padded = _round_up(batch, 128)
        if padded <= 256:
            tb = 128
        else:
            # Aim for >= 2 tiles so the "parallel" axis can split across both
            # TensorCores on v7x; cap the tile at 512 rows.
            tb = min(512, _round_up(padded // 2, 128))
    assert tb % 128 == 0, "tile size must be a multiple of 128 lanes"

    batch_padded = _round_up(batch, tb)
    num_tiles = batch_padded // tb
    pad = batch_padded - batch
    # Pad with valid row 0; padded outputs are sliced off below.
    a_ids = jnp.pad(a_idx.astype(jnp.int32), (0, pad)).reshape(batch_padded, 1)
    b_ids = jnp.pad(b_idx.astype(jnp.int32), (0, pad)).reshape(batch_padded, 1)

    # VMEM budget estimate (tables double-buffered by the default pipeline,
    # id blocks lane-padded to 128, plus matmul transients and slack).
    itemsize = jnp.dtype(A.dtype).itemsize
    table_bytes = num * dim * itemsize
    ids_block_bytes = tb * 128 * 4
    transient_bytes = (2 * tb * _round_up(num, 128) + 3 * tb * dim) * 4
    vmem_est = (4 * table_bytes
                + 4 * ids_block_bytes
                + transient_bytes
                + 4 * tb * 4
                + (2 << 20))
    vmem_limit = int(max(16 * 1024 * 1024,
                         min(vmem_est, int(0.75 * _vmem_cap_bytes()))))

    kernel = _make_mf_kernel(tb, num, dim, A.dtype)

    out = pl.pallas_call(
        kernel,
        out_shape=jax.ShapeDtypeStruct((1, batch_padded), jnp.float32),
        grid_spec=pltpu.PrefetchScalarGridSpec(
            num_scalar_prefetch=0,
            grid=(num_tiles,),                      # one TB-row tile per step
            in_specs=[
                pl.BlockSpec((tb, 1), lambda i: (i, 0)),     # a ids (per tile)
                pl.BlockSpec((tb, 1), lambda i: (i, 0)),     # b ids (per tile)
                # Full tables, constant block index -> VMEM resident.
                pl.BlockSpec((num, dim), lambda i: (0, 0)),
                pl.BlockSpec((num, dim), lambda i: (0, 0)),
            ],
            out_specs=pl.BlockSpec((1, tb), lambda i: (0, i)),
        ),
        compiler_params=pltpu.CompilerParams(
            dimension_semantics=("parallel",),      # independent tiles (2 TCs on v7x)
            vmem_limit_bytes=vmem_limit,
        ),
    )(a_ids, b_ids, A, B)

    return out[0, :batch]                           # (batch,)


if __name__ == "__main__":
    # Small, deterministic setup consistent with MatrixFactorization(dim, num).
    dim, num, batch = 128, 16, 8

    key = jax.random.PRNGKey(0)
    kA, kB, kia, kib = jax.random.split(key, 4)

    # nn.Embedding default weight init is N(0, 1).
    A = jax.random.normal(kA, (num, dim), dtype=jnp.float32)
    B = jax.random.normal(kB, (num, dim), dtype=jnp.float32)

    a_idx = jax.random.randint(kia, (batch,), 0, num, dtype=jnp.int32)
    b_idx = jax.random.randint(kib, (batch,), 0, num, dtype=jnp.int32)

    out = matrix_factorization_forward(A, B, a_idx, b_idx)
    out = jax.block_until_ready(out)

    # Reference (plain JAX) check of the forward semantics.
    ref = jnp.sum(A[a_idx] * B[b_idx], axis=1)
    assert out.shape == (batch,)
    assert jnp.allclose(out, ref, atol=1e-3, rtol=1e-3)

    print("KERNEL_OK")
</pallas_src>

<mosaic_0001>
module attributes {stable_mosaic.version = 11 : i64} {
  func.func @kernel(%arg0: i32, %arg1: memref<128x1xi32, #tpu.memory_space<vmem>>, %arg2: memref<128x1xi32, #tpu.memory_space<vmem>>, %arg3: memref<16x128xf32, #tpu.memory_space<vmem>>, %arg4: memref<16x128xf32, #tpu.memory_space<vmem>>, %arg5: memref<1x128xf32, #tpu.memory_space<vmem>>) attributes {dimension_semantics = [#tpu.dimension_semantics<parallel>], iteration_bounds = array<i64: 1>, scalar_prefetch = 0 : i64, scratch_operands = 0 : i64, tpu.core_type = #tpu.core_type<tc>, window_params = [{transform_indices = @transform_0, window_bounds = array<i64: 128, 1>}, {transform_indices = @transform_1, window_bounds = array<i64: 128, 1>}, {pipeline_mode = #tpu.pipeline_mode<synchronous>, transform_indices = @transform_2, window_bounds = array<i64: 16, 128>}, {pipeline_mode = #tpu.pipeline_mode<synchronous>, transform_indices = @transform_3, window_bounds = array<i64: 16, 128>}, {transform_indices = @transform_4, window_bounds = array<i64: 1, 128>}]} {
    %c0 = arith.constant 0 : index
    %c0_0 = arith.constant 0 : index
    %0 = vector.load %arg1[%c0, %c0_0] : memref<128x1xi32, #tpu.memory_space<vmem>>, vector<128x1xi32>
    %c0_1 = arith.constant 0 : index
    %c0_2 = arith.constant 0 : index
    %1 = vector.load %arg2[%c0_1, %c0_2] : memref<128x1xi32, #tpu.memory_space<vmem>>, vector<128x1xi32>
    %2 = tpu.iota {dimensions = array<i32: 1>} : vector<128x16xi32>
    %3 = vector.broadcast %0 : vector<128x1xi32> to vector<128x16xi32>
    %4 = arith.cmpi eq, %3, %2 : vector<128x16xi32>
    %5 = arith.extui %4 : vector<128x16xi1> to vector<128x16xi32>
    %6 = arith.sitofp %5 : vector<128x16xi32> to vector<128x16xf32>
    %7 = vector.broadcast %1 : vector<128x1xi32> to vector<128x16xi32>
    %8 = arith.cmpi eq, %7, %2 : vector<128x16xi32>
    %9 = arith.extui %8 : vector<128x16xi1> to vector<128x16xi32>
    %10 = arith.sitofp %9 : vector<128x16xi32> to vector<128x16xf32>
    %c0_3 = arith.constant 0 : index
    %c0_4 = arith.constant 0 : index
    %11 = vector.load %arg3[%c0_3, %c0_4] : memref<16x128xf32, #tpu.memory_space<vmem>>, vector<16x128xf32>
    %cst = arith.constant dense<0.000000e+00> : vector<128x128xf32>
    %12 = tpu.matmul %6, %11, %cst {dimension_numbers = #tpu.dot_dimension_numbers<[1], [0], [0], [1], [0, 0, 1, 1], [], []>, precision = #tpu.contract_precision<fp32>} : vector<128x16xf32>, vector<16x128xf32>, vector<128x128xf32> -> vector<128x128xf32>
    %c0_5 = arith.constant 0 : index
    %c0_6 = arith.constant 0 : index
    %13 = vector.load %arg4[%c0_5, %c0_6] : memref<16x128xf32, #tpu.memory_space<vmem>>, vector<16x128xf32>
    %cst_7 = arith.constant dense<0.000000e+00> : vector<128x128xf32>
    %14 = tpu.matmul %10, %13, %cst_7 {dimension_numbers = #tpu.dot_dimension_numbers<[1], [0], [0], [1], [0, 0, 1, 1], [], []>, precision = #tpu.contract_precision<fp32>} : vector<128x16xf32>, vector<16x128xf32>, vector<128x128xf32> -> vector<128x128xf32>
    %15 = arith.mulf %12, %14 : vector<128x128xf32>
    %cst_8 = arith.constant 1.000000e+00 : f32
    %16 = vector.broadcast %cst_8 : f32 to vector<1x128xf32>
    %cst_9 = arith.constant dense<0.000000e+00> : vector<1x128xf32>
    %17 = tpu.matmul %16, %15, %cst_9 {dimension_numbers = #tpu.dot_dimension_numbers<[1], [1], [0], [0], [0, 0, 1, 0], [], []>, precision = #tpu.contract_precision<fp32>} : vector<1x128xf32>, vector<128x128xf32>, vector<1x128xf32> -> vector<1x128xf32>
    %c0_10 = arith.constant 0 : index
    %c0_11 = arith.constant 0 : index
    %18 = vector.load %arg5[%c0_10, %c0_11] : memref<1x128xf32, #tpu.memory_space<vmem>>, vector<1x128xf32>
    tpu.vector_store %arg5[%c0_10, %c0_11], %17 {strides = array<i32>} : memref<1x128xf32, #tpu.memory_space<vmem>>, vector<1x128xf32>,
    return
  }
  func.func @transform_0(%arg0: i32) -> (i32, i32) {
    %c0_i32 = arith.constant 0 : i32
    %c0_i32_0 = arith.constant 0 : i32
    return %arg0, %c0_i32 : i32, i32
  }
  func.func @transform_1(%arg0: i32) -> (i32, i32) {
    %c0_i32 = arith.constant 0 : i32
    %c0_i32_0 = arith.constant 0 : i32
    return %arg0, %c0_i32 : i32, i32
  }
  func.func @transform_2(%arg0: i32) -> (i32, i32) {
    %c0_i32 = arith.constant 0 : i32
    %c0_i32_0 = arith.constant 0 : i32
    %c0_i32_1 = arith.constant 0 : i32
    return %c0_i32, %c0_i32_0 : i32, i32
  }
  func.func @transform_3(%arg0: i32) -> (i32, i32) {
    %c0_i32 = arith.constant 0 : i32
    %c0_i32_0 = arith.constant 0 : i32
    %c0_i32_1 = arith.constant 0 : i32
    return %c0_i32, %c0_i32_0 : i32, i32
  }
  func.func @transform_4(%arg0: i32) -> (i32, i32) {
    %c0_i32 = arith.constant 0 : i32
    %c0_i32_0 = arith.constant 0 : i32
    return %c0_i32, %arg0 : i32, i32
  }
}

</mosaic_0001>

<bundles_post_ra>
// kernel: matrix_factorization_forward.1
= control target key start
LH: loop header
LB: loop body
LE: loop exit
PB: predicated region body
PF: predicated region fallthrough
CT: control target
= control target key end

     0   :  { %v4199_v0 = vmov 0   ;;  %v49_v45 = vlaneseq  ;;  %vm245_vm0 = vcmask 130048   ;;  %v5556_v49 = vmov 0.0   ;;  %s5551_s0 = inlined_call_operand.vmem [shape: s32[128,1], index: 0, kind: input, shape index: {}]   ;;  %s5552_s2 = inlined_call_operand.vmem [shape: f32[16,128], index: 2, kind: input, shape index: {}]   ;;  %s5553_s1 = inlined_call_operand.vmem [shape: s32[128,1], index: 1, kind: input, shape index: {}]   ;;  %s5554_s3 = inlined_call_operand.vmem [shape: f32[16,128], index: 3, kind: input, shape index: {}]   ;;  %s5555_s4 = inlined_call_operand.vmem [shape: f32[1,128], index: 4, kind: output, shape index: {}]  }
   0x1   :  { %4198 = vset.pattern.permute.xlu1 %v4199_v0  ;;  %4197 = vset.pattern.permute.xlu0 %v4199_v0  ;;  %v19_v1 = vld [vmem:[%s5551_s0 + $0x10] sm:$0xff]  ;;  %v17_v2 = vld [vmem:[%s5551_s0] sm:$0xff]  ;;  %v20_v3 = vld [vmem:[%s5551_s0 + $0x18] sm:$0xff] }
   0x2   :  { %58 = vperm.xlu1 %4198, %v19_v1   ;;  %52 = vperm.xlu0 %4197, %v17_v2   ;;  %v18_v4 = vld [vmem:[%s5551_s0 + $0x8] sm:$0xff]  ;;  %v21_v6 = vld [vmem:[%s5551_s0 + $0x20] sm:$0xff]  ;;  %v24_v7 = vld [vmem:[%s5551_s0 + $0x38] sm:$0xff]  ;;  %v4356_v46 = vand.u32 127, %v49_v45 }
   0x3   :  { %v22_v5 = vld [vmem:[%s5551_s0 + $0x28] sm:$0xff]  ;;  %v23_v8 = vld [vmem:[%s5551_s0 + $0x30] sm:$0xff]  ;;  %v243_v9 = vld [vmem:[%s5552_s2] sm:$0xff] }
   0x4   :  { %v244_v10 = vld [vmem:[%s5552_s2 + $0x8] sm:$0xff]  ;;  %v4258_v11 = vand.u32 4294901760, %v243_v9  ;;  %v25_v15 = vld [vmem:[%s5551_s0 + $0x40] sm:$0xff]  ;;  %v28_v20 = vld [vmem:[%s5551_s0 + $0x58] sm:$0xff] }
   0x5   :  { %v4260_v12 = vand.u32 4294901760, %v244_v10  ;;  %v26_v14 = vld [vmem:[%s5551_s0 + $0x48] sm:$0xff]  ;;  %v27_v21 = vld [vmem:[%s5551_s0 + $0x50] sm:$0xff]  ;;  %v29_v26 = vld [vmem:[%s5551_s0 + $0x60] sm:$0xff] }
   0x6   :  { %61 = vperm.xlu1 %4198, %v20_v3   ;;  %55 = vperm.xlu0 %4197, %v18_v4   ;;  %v4263_v13 = vsub.f32 %v243_v9, %v4258_v11  ;;  %v30_v25 = vld [vmem:[%s5551_s0 + $0x68] sm:$0xff]  ;;  %v32_v27 = vld [vmem:[%s5551_s0 + $0x78] sm:$0xff]  ;;  %v31_v28 = vld [vmem:[%s5551_s0 + $0x70] sm:$0xff] }
   0x7   :  { %v4272_v16 = vsub.f32 %v244_v10, %v4260_v12  ;;  %3647 = vmatprep.subr.mxu0 %v4260_v12  ;;  %v34_v29 = vld [vmem:[%s5553_s1 + $0x8] sm:$0xff]  ;;  %v33_v30 = vld [vmem:[%s5553_s1] sm:$0xff]  ;;  %v36_v31 = vld [vmem:[%s5553_s1 + $0x18] sm:$0xff] }
   0x8   :  { %v4276_v17 = vand.u32 4294901760, %v4263_v13  ;;  %3648 = vmatpush3.msra.mxu0 %v4260_v12  ;;  %v35_v32 = vld [vmem:[%s5553_s1 + $0x10] sm:$0xff]  ;;  %v38_v33 = vld [vmem:[%s5553_s1 + $0x28] sm:$0xff]  ;;  %v37_v34 = vld [vmem:[%s5553_s1 + $0x20] sm:$0xff] }
   0x9   :  { %v4280_v18 = vand.u32 4294901760, %v4272_v16  ;;  %3649 = vmatprep.subr.mxu0 %v4258_v11  ;;  %v40_v35 = vld [vmem:[%s5553_s1 + $0x38] sm:$0xff]  ;;  %v39_v36 = vld [vmem:[%s5553_s1 + $0x30] sm:$0xff]  ;;  %v42_v37 = vld [vmem:[%s5553_s1 + $0x48] sm:$0xff] }
   0xa   :  { %67 = vperm.xlu1 %4198, %v22_v5   ;;  %64 = vperm.xlu0 %4197, %v21_v6   ;;  %v560_v19 = vsub.f32 %v4263_v13, %v4276_v17  ;;  %v41_v38 = vld [vmem:[%s5553_s1 + $0x40] sm:$0xff]  ;;  %v44_v39 = vld [vmem:[%s5553_s1 + $0x58] sm:$0xff]  ;;  %v43_v40 = vld [vmem:[%s5553_s1 + $0x50] sm:$0xff] }
   0xb   :  { %v553_v22 = vsub.f32 %v4272_v16, %v4280_v18  ;;  %3650 = vmatpush3.msra.mxu0 %v4258_v11  ;;  %v46_v41 = vld [vmem:[%s5553_s1 + $0x68] sm:$0xff]  ;;  %v45_v42 = vld [vmem:[%s5553_s1 + $0x60] sm:$0xff]  ;;  %v48_v43 = vld [vmem:[%s5553_s1 + $0x78] sm:$0xff] }
   0xc   :  { %3703 = vmatprep.subr.mxu0 %v4272_v16  ;;  %v561_v24 = vand.u32 4294901760, %v560_v19  ;;  %v47_v44 = vld [vmem:[%s5553_s1 + $0x70] sm:$0xff] }
   0xd   :  { %v554_v23 = vand.u32 4294901760, %v553_v22 }
   0xe   :  { %73 = vperm.xlu1 %4198, %v24_v7   ;;  %70 = vperm.xlu0 %4197, %v23_v8  }
   0xf   :  { %3675 = vmatprep.subr.mxu1 %v554_v23 }
  0x10   :  { %3676 = vmatpush3.msra.mxu1 %v554_v23 }
  0x11   :  { %3677 = vmatprep.subr.mxu1 %v561_v24 }
  0x12   :  { %79 = vperm.xlu1 %4198, %v26_v14   ;;  %76 = vperm.xlu0 %4197, %v25_v15  }
  0x13   :  { %3678 = vmatpush3.msra.mxu1 %v561_v24 }
  0x14   :  { %3731 = vmatprep.subr.mxu1 %v4260_v12 }
  0x16   :  { %85 = vperm.xlu1 %4198, %v28_v20   ;;  %82 = vperm.xlu0 %4197, %v27_v21  }
  0x1a   :  { %91 = vperm.xlu1 %4198, %v30_v25   ;;  %88 = vperm.xlu0 %4197, %v29_v26  }
  0x1e   :  { %97 = vperm.xlu1 %4198, %v32_v27   ;;  %94 = vperm.xlu0 %4197, %v31_v28  }
  0x22   :  { %151 = vperm.xlu1 %4198, %v34_v29   ;;  %148 = vperm.xlu0 %4197, %v33_v30  }
  0x26   :  { %157 = vperm.xlu1 %4198, %v36_v31   ;;  %154 = vperm.xlu0 %4197, %v35_v32  }
  0x2a   :  { %163 = vperm.xlu1 %4198, %v38_v33   ;;  %160 = vperm.xlu0 %4197, %v37_v34  }
  0x2e   :  { %169 = vperm.xlu1 %4198, %v40_v35   ;;  %166 = vperm.xlu0 %4197, %v39_v36  }
  0x32   :  { %175 = vperm.xlu1 %4198, %v42_v37   ;;  %172 = vperm.xlu0 %4197, %v41_v38  }
  0x36   :  { %181 = vperm.xlu1 %4198, %v44_v39   ;;  %178 = vperm.xlu0 %4197, %v43_v40  }
  0x3a   :  { %187 = vperm.xlu1 %4198, %v46_v41   ;;  %184 = vperm.xlu0 %4197, %v45_v42  }
  0x3e   :  { %193 = vperm.xlu1 %4198, %v48_v43   ;;  %190 = vperm.xlu0 %4197, %v47_v44  }
  0x7d   :  { %v59_v47 = vpop.permute.xlu1 %58  ;;  %v53_v48 = vpop.permute.xlu0 %52 }
  0x7e   :  { %vm101_vm1 = vcmp.eq.s32.totalorder %v59_v47, %v4356_v46  ;;  %vm99_vm2 = vcmp.eq.s32.totalorder %v53_v48, %v4356_v46 }
  0x7f   :  { %v4361_v50 = vsel %vm101_vm1, 1.0, %v5556_v49  ;;  %v4364_v51 = vsel %vm99_vm2, 1.0, %v5556_v49 }
  0x80   :  { %v253_v52 = vsel %vm245_vm0, %v4361_v50, 0  ;;  %3679 = vmatprep.mubr.msk.f32.mxu1 %vm245_vm0, %v4364_v51  ;;  %v247_v53 = vsel %vm245_vm0, %v4364_v51, 0 }
  0x81   :  { %v4372_v54 = vsub.f32 %v253_v52, %v253_v52  ;;  %v62_v55 = vpop.permute.xlu1 %61  ;;  %v56_v56 = vpop.permute.xlu0 %55  ;;  %v4374_v57 = vsub.f32 %v247_v53, %v247_v53 }
  0x82   :  { %vm102_vm3 = vcmp.eq.s32.totalorder %v62_v55, %v4356_v46  ;;  %vm100_vm4 = vcmp.eq.s32.totalorder %v56_v56, %v4356_v46  ;;  %v1399_v56 = vld [vmem:[%s5554_s3 + $0x8] sm:$0xff] }
  0x83   :  { %v4379_v58 = vsel %vm102_vm3, 1.0, %v5556_v49  ;;  %v4382_v59 = vsel %vm100_vm4, 1.0, %v5556_v49  ;;  %v363_v60 = vand.u32 4294901760, %v4374_v57  ;;  %v383_v63 = vand.u32 4294901760, %v4372_v54 }
  0x84   :  { %v256_v61 = vsel %vm245_vm0, %v4379_v58, 0  ;;  %v250_v62 = vsel %vm245_vm0, %v4382_v59, 0  ;;  %3680 = vmatmul.mubr.msk.f32.vlgmr.msra.gmra.mxu1 %vm245_vm0, %v4382_v59 }
  0x85   :  { %v4392_v0 = vsub.f32 %v256_v61, %v256_v61  ;;  %v4394_v1 = vsub.f32 %v250_v62, %v250_v62  ;;  %v68_v2 = vpop.permute.xlu1 %67  ;;  %3682 = vmatprep.mubr.msk.f32.mxu1 %vm245_vm0, %v4361_v50  ;;  %v65_v3 = vpop.permute.xlu0 %64  ;;  %v364_v4 = vsub.f32 %v4374_v57, %v363_v60  ;;  %3732 = vmatpush3.msra.mxu1 %v4260_v12 }
  0x86   :  { %vm104_vm5 = vcmp.eq.s32.totalorder %v68_v2, %v4356_v46  ;;  %vm103_vm6 = vcmp.eq.s32.totalorder %v65_v3, %v4356_v46  ;;  %3733 = vmatprep.subr.mxu1 %v4258_v11  ;;  %v384_v14 = vsub.f32 %v4372_v54, %v383_v63 }
  0x87   :  { %v4405_v5 = vsel %vm104_vm5, 1.0, %v5556_v49  ;;  %v4408_v6 = vsel %vm103_vm6, 1.0, %v5556_v49  ;;  %v365_v7 = vand.u32 4294901760, %v364_v4  ;;  %v373_v8 = vand.u32 4294901760, %v4394_v1  ;;  %3734 = vmatpush3.msra.mxu1 %v4258_v11 }
  0x88   :  { %v262_v9 = vsel %vm245_vm0, %v4405_v5, 0  ;;  %v259_v10 = vsel %vm245_vm0, %v4408_v6, 0  ;;  %3683 = vmatmul.mubr.msk.f32.gmra.mxu1 %vm245_vm0, %v4379_v58  ;;  %v393_v15 = vand.u32 4294901760, %v4392_v0  ;;  %3787 = vmatprep.subr.mxu1 %v4260_v12  ;;  %v385_v31 = vand.u32 4294901760, %v384_v14 }
  0x89   :  { %v4422_v19 = vsub.f32 %v262_v9, %v262_v9  ;;  %v4424_v20 = vsub.f32 %v259_v10, %v259_v10  ;;  %v74_v21 = vpop.permute.xlu1 %73  ;;  %3651 = vmatprep.mubr.f32.mxu0 %v365_v7  ;;  %3685 = vmatprep.mubr.msk.f32.mxu1 %vm245_vm0, %v4408_v6  ;;  %v71_v22 = vpop.permute.xlu0 %70  ;;  %v374_v23 = vsub.f32 %v4394_v1, %v373_v8  ;;  %v4515_v14 = vand.u32 4294901760, %v1399_v56 }
  0x8a   :  { %vm106_vm7 = vcmp.eq.s32.totalorder %v74_v21, %v4356_v46  ;;  %vm105_vm8 = vcmp.eq.s32.totalorder %v71_v22, %v4356_v46  ;;  %v394_v24 = vsub.f32 %v4392_v0, %v393_v15 }
  0x8b   :  { %v4438_v25 = vsel %vm106_vm7, 1.0, %v5556_v49  ;;  %v4441_v26 = vsel %vm105_vm8, 1.0, %v5556_v49  ;;  %v375_v27 = vand.u32 4294901760, %v374_v23  ;;  %v403_v28 = vand.u32 4294901760, %v4424_v20 }
  0x8c   :  { %v268_v29 = vsel %vm245_vm0, %v4438_v25, 0  ;;  %v265_v30 = vsel %vm245_vm0, %v4441_v26, 0  ;;  %3686 = vmatmul.mubr.msk.f32.gmra.mxu1 %vm245_vm0, %v4405_v5  ;;  %v413_v32 = vand.u32 4294901760, %v4422_v19  ;;  %v395_v38 = vand.u32 4294901760, %v394_v24 }
  0x8d   :  { %v4452_v33 = vsub.f32 %v268_v29, %v268_v29  ;;  %v4454_v34 = vsub.f32 %v265_v30, %v265_v30  ;;  %v80_v35 = vpop.permute.xlu1 %79  ;;  %3652 = vmatmul.mubr.f32.vlgmr.msra.gmra.mxu0 %v375_v27  ;;  %3688 = vmatprep.mubr.msk.f32.mxu1 %vm245_vm0, %v4441_v26  ;;  %v77_v36 = vpop.permute.xlu0 %76  ;;  %v404_v37 = vsub.f32 %v4424_v20, %v403_v28 }
  0x8e   :  { %vm108_vm9 = vcmp.eq.s32.totalorder %v80_v35, %v4356_v46  ;;  %3704 = vmatpush3.msra.mxu0 %v4272_v16  ;;  %vm107_vm10 = vcmp.eq.s32.totalorder %v77_v36, %v4356_v46  ;;  %3654 = vmatprep.mubr.f32.mxu0 %v385_v31  ;;  %v414_v39 = vsub.f32 %v4422_v19, %v413_v32 }
  0x8f   :  { %v4468_v40 = vsel %vm108_vm9, 1.0, %v5556_v49  ;;  %v4471_v41 = vsel %vm107_vm10, 1.0, %v5556_v49  ;;  %v405_v42 = vand.u32 4294901760, %v404_v37  ;;  %v423_v43 = vand.u32 4294901760, %v4454_v34  ;;  %3705 = vmatprep.subr.mxu0 %v4263_v13 }
  0x90   :  { %v274_v16 = vsel %vm245_vm0, %v4468_v40, 0  ;;  %v271_v44 = vsel %vm245_vm0, %v4471_v41, 0  ;;  %3689 = vmatmul.mubr.msk.f32.gmra.mxu1 %vm245_vm0, %v4438_v25  ;;  %v433_v45 = vand.u32 4294901760, %v4452_v33  ;;  %3706 = vmatpush3.msra.mxu0 %v4263_v13  ;;  %v415_v13 = vand.u32 4294901760, %v414_v39 }
  0x91   :  { %v4483_v47 = vsub.f32 %v274_v16, %v274_v16  ;;  %v4485_v48 = vsub.f32 %v271_v44, %v271_v44  ;;  %v86_v52 = vpop.permute.xlu1 %85  ;;  %3655 = vmatmul.mubr.f32.gmra.mxu0 %v395_v38  ;;  %3691 = vmatprep.mubr.msk.f32.mxu1 %vm245_vm0, %v4471_v41  ;;  %v83_v53 = vpop.permute.xlu0 %82  ;;  %v424_v55 = vsub.f32 %v4454_v34, %v423_v43 }
  0x92   :  { %vm110_vm11 = vcmp.eq.s32.totalorder %v86_v52, %v4356_v46  ;;  %vm109_vm12 = vcmp.eq.s32.totalorder %v83_v53, %v4356_v46  ;;  %3657 = vmatprep.mubr.f32.mxu0 %v405_v42  ;;  %v434_v61 = vsub.f32 %v4452_v33, %v433_v45  ;;  %3759 = vmatprep.subr.mxu0 %v4280_v18 }
  0x93   :  { %v4502_v62 = vsel %vm110_vm11, 1.0, %v5556_v49  ;;  %v4505_v2 = vsel %vm109_vm12, 1.0, %v5556_v49  ;;  %v425_v3 = vand.u32 4294901760, %v424_v55  ;;  %v443_v4 = vand.u32 4294901760, %v4485_v48 }
  0x94   :  { %v280_v7 = vsel %vm245_vm0, %v4502_v62, 0  ;;  %v277_v9 = vsel %vm245_vm0, %v4505_v2, 0  ;;  %3692 = vmatmul.mubr.msk.f32.gmra.mxu1 %vm245_vm0, %v4468_v40  ;;  %v453_v10 = vand.u32 4294901760, %v4483_v47  ;;  %v435_v29 = vand.u32 4294901760, %v434_v61 }
  0x95   :  { %v4517_v21 = vsub.f32 %v280_v7, %v280_v7  ;;  %v4519_v22 = vsub.f32 %v277_v9, %v277_v9  ;;  %v92_v23 = vpop.permute.xlu1 %91  ;;  %3658 = vmatmul.mubr.f32.gmra.mxu0 %v415_v13  ;;  %3694 = vmatprep.mubr.msk.f32.mxu1 %vm245_vm0, %v4505_v2  ;;  %v89_v24 = vpop.permute.xlu0 %88  ;;  %v444_v27 = vsub.f32 %v4485_v48, %v443_v4 }
  0x96   :  { %vm112_vm13 = vcmp.eq.s32.totalorder %v92_v23, %v4356_v46  ;;  %vm111_vm14 = vcmp.eq.s32.totalorder %v89_v24, %v4356_v46  ;;  %3660 = vmatprep.mubr.f32.mxu0 %v425_v3  ;;  %v454_v30 = vsub.f32 %v4483_v47, %v453_v10  ;;  %v4546_v16 = vsub.f32 %v1399_v56, %v4515_v14 }
  0x97   :  { %v4532_v31 = vsel %vm112_vm13, 1.0, %v5556_v49  ;;  %v4535_v35 = vsel %vm111_vm14, 1.0, %v5556_v49  ;;  %v445_v36 = vand.u32 4294901760, %v444_v27  ;;  %v463_v37 = vand.u32 4294901760, %v4519_v22 }
  0x98   :  { %v286_v38 = vsel %vm245_vm0, %v4532_v31, 0  ;;  %v283_v39 = vsel %vm245_vm0, %v4535_v35, 0  ;;  %3695 = vmatmul.mubr.msk.f32.gmra.mxu1 %vm245_vm0, %v4502_v62  ;;  %v473_v42 = vand.u32 4294901760, %v4517_v21  ;;  %v455_v56 = vand.u32 4294901760, %v454_v30 }
  0x99   :  { %v4548_v44 = vsub.f32 %v286_v38, %v286_v38  ;;  %v4550_v52 = vsub.f32 %v283_v39, %v283_v39  ;;  %v98_v53 = vpop.permute.xlu1 %97  ;;  %3661 = vmatmul.mubr.f32.gmra.mxu0 %v435_v29  ;;  %3697 = vmatprep.mubr.msk.f32.mxu1 %vm245_vm0, %v4535_v35  ;;  %v95_v55 = vpop.permute.xlu0 %94  ;;  %v464_v13 = vsub.f32 %v4519_v22, %v463_v37  ;;  %v4584_v39 = vand.u32 4294901760, %v4546_v16 }
  0x9a   :  { %vm114_vm15 = vcmp.eq.s32.totalorder %v98_v53, %v4356_v46  ;;  %vm113_vm1 = vcmp.eq.s32.totalorder %v95_v55, %v4356_v46  ;;  %3663 = vmatprep.mubr.f32.mxu0 %v445_v36  ;;  %v474_v61 = vsub.f32 %v4517_v21, %v473_v42 }
  0x9b   :  { %v4563_v3 = vsel %vm114_vm15, 1.0, %v5556_v49  ;;  %v4566_v7 = vsel %vm113_vm1, 1.0, %v5556_v49  ;;  %v465_v9 = vand.u32 4294901760, %v464_v13  ;;  %v483_v23 = vand.u32 4294901760, %v4550_v52 }
  0x9c   :  { %v292_v24 = vsel %vm245_vm0, %v4563_v3, 0  ;;  %v289_v27 = vsel %vm245_vm0, %v4566_v7, 0  ;;  %3698 = vmatmul.mubr.msk.f32.gmra.mxu1 %vm245_vm0, %v4532_v31  ;;  %v493_v29 = vand.u32 4294901760, %v4548_v44  ;;  %v475_v53 = vand.u32 4294901760, %v474_v61 }
  0x9d   :  { %v4576_v30 = vsub.f32 %v292_v24, %v292_v24  ;;  %v4578_v36 = vsub.f32 %v289_v27, %v289_v27  ;;  %3664 = vmatmul.mubr.f32.gmra.mxu0 %v455_v56  ;;  %3700 = vmatprep.mubr.msk.f32.mxu1 %vm245_vm0, %v4566_v7  ;;  %v484_v38 = vsub.f32 %v4550_v52, %v483_v23 }
  0x9e   :  { %3666 = vmatprep.mubr.f32.mxu0 %v465_v9  ;;  %v494_v13 = vsub.f32 %v4548_v44, %v493_v29 }
  0x9f   :  { %v485_v55 = vand.u32 4294901760, %v484_v38  ;;  %v503_v49 = vand.u32 4294901760, %v4578_v36  ;;  %v513_v56 = vand.u32 4294901760, %v4576_v30  ;;  %v1707_v38 = vsub.f32 %v4546_v16, %v4584_v39 }
  0xa0   :  { %3701 = vmatmul.mubr.msk.f32.gmra.mxu1 %vm245_vm0, %v4563_v3  ;;  %v495_v24 = vand.u32 4294901760, %v494_v13 }
  0xa1   :  { %3667 = vmatmul.mubr.f32.gmra.mxu0 %v475_v53  ;;  %3735 = vmatprep.mubr.f32.mxu1 %v363_v60  ;;  %v504_v9 = vsub.f32 %v4578_v36, %v503_v49  ;;  %v514_v61 = vsub.f32 %v4576_v30, %v513_v56  ;;  %v1708_v53 = vand.u32 4294901760, %v1707_v38 }
  0xa2   :  { %3669 = vmatprep.mubr.f32.mxu0 %v485_v55 }
  0xa3   :  { %v505_v27 = vand.u32 4294901760, %v504_v9  ;;  %v515_v60 = vand.u32 4294901760, %v514_v61 }
  0xa4   :  { %3736 = vmatmul.mubr.f32.vlgmr.msra.gmra.mxu1 %v373_v8 }
  0xa5   :  { %3670 = vmatmul.mubr.f32.gmra.mxu0 %v495_v24  ;;  %3738 = vmatprep.mubr.f32.mxu1 %v383_v63 }
  0xa6   :  { %3672 = vmatprep.mubr.f32.mxu0 %v505_v27  ;;  %3788 = vmatpush3.msra.mxu1 %v4260_v12 }
  0xa7   :  { %3789 = vmatprep.subr.mxu1 %v4258_v11 }
  0xa8   :  { %3739 = vmatmul.mubr.f32.gmra.mxu1 %v393_v15 }
  0xa9   :  { %3673 = vmatmul.mubr.f32.gmra.mxu0 %v515_v60  ;;  %3741 = vmatprep.mubr.f32.mxu1 %v403_v28 }
  0xaa   :  { %3707 = vmatprep.mubr.f32.mxu0 %v4374_v57  ;;  %3790 = vmatpush3.msra.mxu1 %v4258_v11  ;;  %v1398_v11 = vld [vmem:[%s5554_s3] sm:$0xff]  ;;  %v149_v57 = vpop.permute.xlu0 %148 }
  0xab   :  { %3843 = vmatprep.subr.mxu1 %v1708_v53  ;;  %v4628_v12 = vand.u32 4294901760, %v1398_v11  ;;  %vm195_vm2 = vcmp.eq.s32.totalorder %v149_v57, %v4356_v46 }
  0xac   :  { %3742 = vmatmul.mubr.f32.gmra.mxu1 %v413_v32 }
  0xad   :  { %3708 = vmatmul.mubr.f32.vlgmr.msra.gmra.mxu0 %v4394_v1  ;;  %3744 = vmatprep.mubr.f32.mxu1 %v423_v43 }
  0xae   :  { %3760 = vmatpush3.msra.mxu0 %v4280_v18  ;;  %3710 = vmatprep.mubr.f32.mxu0 %v4372_v54 }
  0xaf   :  { %3761 = vmatprep.subr.mxu0 %v4276_v17 }
  0xb0   :  { %3745 = vmatmul.mubr.f32.gmra.mxu1 %v433_v45  ;;  %3762 = vmatpush3.msra.mxu0 %v4276_v17  ;;  %v4637_v17 = vsub.f32 %v1398_v11, %v4628_v12 }
  0xb1   :  { %3711 = vmatmul.mubr.f32.gmra.mxu0 %v4392_v0  ;;  %3747 = vmatprep.mubr.f32.mxu1 %v443_v4  ;;  %v152_v0 = vpop.permute.xlu1 %151 }
  0xb2   :  { %3713 = vmatprep.mubr.f32.mxu0 %v4424_v20  ;;  %3815 = vmatprep.subr.mxu0 %v4515_v14  ;;  %v4644_v18 = vand.u32 4294901760, %v4637_v17  ;;  %vm196_vm3 = vcmp.eq.s32.totalorder %v152_v0, %v4356_v46 }
  0xb4   :  { %3748 = vmatmul.mubr.f32.gmra.mxu1 %v453_v10  ;;  %v1714_v54 = vsub.f32 %v4637_v17, %v4644_v18 }
  0xb5   :  { %3714 = vmatmul.mubr.f32.gmra.mxu0 %v4422_v19  ;;  %3750 = vmatprep.mubr.f32.mxu1 %v463_v37  ;;  %v158_v1 = vpop.permute.xlu1 %157 }
  0xb6   :  { %3716 = vmatprep.mubr.f32.mxu0 %v4454_v34  ;;  %v1715_v63 = vand.u32 4294901760, %v1714_v54  ;;  %vm198_vm5 = vcmp.eq.s32.totalorder %v158_v1, %v4356_v46 }
  0xb8   :  { %3751 = vmatmul.mubr.f32.gmra.mxu1 %v473_v42 }
  0xb9   :  { %3717 = vmatmul.mubr.f32.gmra.mxu0 %v4452_v33  ;;  %3753 = vmatprep.mubr.f32.mxu1 %v483_v23 }
  0xba   :  { %3719 = vmatprep.mubr.f32.mxu0 %v4485_v48 }
  0xbc   :  { %3754 = vmatmul.mubr.f32.gmra.mxu1 %v493_v29 }
  0xbd   :  { %3720 = vmatmul.mubr.f32.gmra.mxu0 %v4483_v47  ;;  %3756 = vmatprep.mubr.f32.mxu1 %v503_v49  ;;  %v155_v49 = vpop.permute.xlu0 %154 }
  0xbe   :  { %3722 = vmatprep.mubr.f32.mxu0 %v4519_v22  ;;  %vm197_vm4 = vcmp.eq.s32.totalorder %v155_v49, %v4356_v46 }
  0xc0   :  { %3757 = vmatmul.mubr.f32.gmra.mxu1 %v513_v56 }
  0xc1   :  { %3723 = vmatmul.mubr.f32.gmra.mxu0 %v4517_v21  ;;  %3791 = vmatprep.mubr.msk.f32.mxu1 %vm245_vm0, %v4364_v51  ;;  %v161_v8 = vpop.permute.xlu0 %160 }
  0xc2   :  { %3725 = vmatprep.mubr.f32.mxu0 %v4550_v52  ;;  %vm199_vm6 = vcmp.eq.s32.totalorder %v161_v8, %v4356_v46 }
  0xc4   :  { %3792 = vmatmul.mubr.msk.f32.vlgmr.msra.gmra.mxu1 %vm245_vm0, %v4382_v59 }
  0xc5   :  { %3726 = vmatmul.mubr.f32.gmra.mxu0 %v4548_v44  ;;  %3794 = vmatprep.mubr.msk.f32.mxu1 %vm245_vm0, %v4361_v50 }
  0xc6   :  { %3728 = vmatprep.mubr.f32.mxu0 %v4578_v36  ;;  %3844 = vmatpush3.msra.mxu1 %v1708_v53 }
  0xc7   :  { %3845 = vmatprep.subr.mxu1 %v1715_v63 }
  0xc8   :  { %3795 = vmatmul.mubr.msk.f32.gmra.mxu1 %vm245_vm0, %v4379_v58 }
  0xc9   :  { %3729 = vmatmul.mubr.f32.gmra.mxu0 %v4576_v30  ;;  %3797 = vmatprep.mubr.msk.f32.mxu1 %vm245_vm0, %v4408_v6 }
  0xca   :  { %3763 = vmatprep.mubr.msk.f32.mxu0 %vm245_vm0, %v4364_v51  ;;  %3846 = vmatpush3.msra.mxu1 %v1715_v63  ;;  %v164_v51 = vpop.permute.xlu1 %163 }
  0xcb   :  { %3899 = vmatprep.subr.mxu1 %v4515_v14  ;;  %vm200_vm7 = vcmp.eq.s32.totalorder %v164_v51, %v4356_v46 }
  0xcc   :  { %3798 = vmatmul.mubr.msk.f32.gmra.mxu1 %vm245_vm0, %v4405_v5 }
  0xcd   :  { %3764 = vmatmul.mubr.msk.f32.vlgmr.msra.gmra.mxu0 %vm245_vm0, %v4382_v59  ;;  %3800 = vmatprep.mubr.msk.f32.mxu1 %vm245_vm0, %v4441_v26  ;;  %v5559_v59 = vmov 0.0  }
  0xce   :  { %3816 = vmatpush3.msra.mxu0 %v4515_v14  ;;  %3766 = vmatprep.mubr.msk.f32.mxu0 %vm245_vm0, %v4361_v50  ;;  %v167_v50 = vpop.permute.xlu0 %166  ;;  %v4693_v15 = vsel %vm195_vm2, 1.0, %v5559_v59  ;;  %v4725_v32 = vsel %vm198_vm5, 1.0, %v5559_v59  ;;  %v4752_v48 = vsel %vm200_vm7, 1.0, %v5559_v59 }
  0xcf   :  { %3817 = vmatprep.subr.mxu0 %v4628_v12  ;;  %v1401_v19 = vsel %vm245_vm0, %v4693_v15, 0  ;;  %v1410_v43 = vsel %vm245_vm0, %v4725_v32, 0  ;;  %vm201_vm8 = vcmp.eq.s32.totalorder %v167_v50, %v4356_v46  ;;  %v1416_v37 = vsel %vm245_vm0, %v4752_v48, 0 }
  0xd0   :  { %3801 = vmatmul.mubr.msk.f32.gmra.mxu1 %vm245_vm0, %v4438_v25  ;;  %3818 = vmatpush3.msra.mxu0 %v4628_v12  ;;  %v4721_v28 = vsub.f32 %v1401_v19, %v1401_v19  ;;  %v4762_v10 = vsub.f32 %v1410_v43, %v1410_v43  ;;  %v4765_v21 = vsel %vm201_vm8, 1.0, %v5559_v59  ;;  %v4800_v55 = vsub.f32 %v1416_v37, %v1416_v37 }
  0xd1   :  { %3767 = vmatmul.mubr.msk.f32.gmra.mxu0 %vm245_vm0, %v4379_v58  ;;  %3803 = vmatprep.mubr.msk.f32.mxu1 %vm245_vm0, %v4471_v41  ;;  %v170_v58 = vpop.permute.xlu1 %169 }
  0xd2   :  { %3769 = vmatprep.mubr.msk.f32.mxu0 %vm245_vm0, %v4408_v6  ;;  %3871 = vmatprep.subr.mxu0 %v4546_v16  ;;  %v4703_v6 = vsel %vm196_vm3, 1.0, %v5559_v59  ;;  %v173_v20 = vpop.permute.xlu0 %172  ;;  %vm202_vm9 = vcmp.eq.s32.totalorder %v170_v58, %v4356_v46  ;;  %v1547_v36 = vand.u32 4294901760, %v4762_v10 }
  0xd3   :  { %vm203_vm10 = vcmp.eq.s32.totalorder %v173_v20, %v4356_v46  ;;  %v4778_v44 = vsel %vm202_vm9, 1.0, %v5559_v59 }
  0xd4   :  { %3804 = vmatmul.mubr.msk.f32.gmra.mxu1 %vm245_vm0, %v4468_v40  ;;  %v4786_v23 = vsel %vm203_vm10, 1.0, %v5559_v59  ;;  %v1548_v53 = vsub.f32 %v4762_v10, %v1547_v36 }
  0xd5   :  { %3770 = vmatmul.mubr.msk.f32.gmra.mxu0 %vm245_vm0, %v4405_v5  ;;  %3806 = vmatprep.mubr.msk.f32.mxu1 %vm245_vm0, %v4505_v2  ;;  %v4715_v5 = vsel %vm197_vm4, 1.0, %v5559_v59  ;;  %v176_v33 = vpop.permute.xlu1 %175  ;;  %v1425_v9 = vsel %vm245_vm0, %v4786_v23, 0 }
  0xd6   :  { %3772 = vmatprep.mubr.msk.f32.mxu0 %vm245_vm0, %v4441_v26  ;;  %v1404_v26 = vsel %vm245_vm0, %v4703_v6, 0  ;;  %v179_v47 = vpop.permute.xlu0 %178  ;;  %vm204_vm11 = vcmp.eq.s32.totalorder %v176_v33, %v4356_v46  ;;  %v4833_v54 = vsub.f32 %v1425_v9, %v1425_v9  ;;  %v1549_v58 = vand.u32 4294901760, %v1548_v53 }
  0xd7   :  { %v4735_v34 = vsub.f32 %v1404_v26, %v1404_v26  ;;  %vm205_vm12 = vcmp.eq.s32.totalorder %v179_v47, %v4356_v46  ;;  %v4817_v27 = vsel %vm204_vm11, 1.0, %v5559_v59 }
  0xd8   :  { %3807 = vmatmul.mubr.msk.f32.gmra.mxu1 %vm245_vm0, %v4502_v62  ;;  %v4827_v60 = vsel %vm205_vm12, 1.0, %v5559_v59  ;;  %v1428_v57 = vsel %vm245_vm0, %v4817_v27, 0  ;;  %v1597_v33 = vand.u32 4294901760, %v4833_v54 }
  0xd9   :  { %3773 = vmatmul.mubr.msk.f32.gmra.mxu0 %vm245_vm0, %v4438_v25  ;;  %3809 = vmatprep.mubr.msk.f32.mxu1 %vm245_vm0, %v4535_v35  ;;  %v1407_v25 = vsel %vm245_vm0, %v4715_v5, 0  ;;  %v182_v22 = vpop.permute.xlu1 %181  ;;  %v1431_v51 = vsel %vm245_vm0, %v4827_v60, 0  ;;  %v4861_v20 = vsub.f32 %v1428_v57, %v1428_v57 }
  0xda   :  { %3775 = vmatprep.mubr.msk.f32.mxu0 %vm245_vm0, %v4471_v41  ;;  %v4739_v41 = vsel %vm199_vm6, 1.0, %v5559_v59  ;;  %v4747_v45 = vsub.f32 %v1407_v25, %v1407_v25  ;;  %v185_v30 = vpop.permute.xlu0 %184  ;;  %vm206_vm13 = vcmp.eq.s32.totalorder %v182_v22, %v4356_v46  ;;  %v4871_v43 = vsub.f32 %v1431_v51, %v1431_v51 }
  0xdb   :  { %v1413_v4 = vsel %vm245_vm0, %v4739_v41, 0  ;;  %vm207_vm14 = vcmp.eq.s32.totalorder %v185_v30, %v4356_v46  ;;  %v4849_v8 = vsel %vm206_vm13, 1.0, %v5559_v59  ;;  %v1598_v30 = vsub.f32 %v4833_v54, %v1597_v33 }
  0xdc   :  { %3810 = vmatmul.mubr.msk.f32.gmra.mxu1 %vm245_vm0, %v4532_v31  ;;  %v4775_v42 = vsub.f32 %v1413_v4, %v1413_v4  ;;  %v1537_v52 = vand.u32 4294901760, %v4747_v45  ;;  %v4857_v50 = vsel %vm207_vm14, 1.0, %v5559_v59 }
  0xdd   :  { %3776 = vmatmul.mubr.msk.f32.gmra.mxu0 %vm245_vm0, %v4468_v40  ;;  %3812 = vmatprep.mubr.msk.f32.mxu1 %vm245_vm0, %v4566_v7  ;;  %v1517_v40 = vand.u32 4294901760, %v4721_v28  ;;  %v188_v61 = vpop.permute.xlu1 %187 }
  0xde   :  { %3778 = vmatprep.mubr.msk.f32.mxu0 %vm245_vm0, %v4505_v2  ;;  %v1527_v2 = vand.u32 4294901760, %v4735_v34  ;;  %v1557_v24 = vand.u32 4294901760, %v4775_v42  ;;  %v191_v63 = vpop.permute.xlu0 %190  ;;  %vm208_vm15 = vcmp.eq.s32.totalorder %v188_v61, %v4356_v46 }
  0xdf   :  { %vm209_vm1 = vcmp.eq.s32.totalorder %v191_v63, %v4356_v46  ;;  %v4882_v22 = vsel %vm208_vm15, 1.0, %v5559_v59  ;;  %v1599_v63 = vand.u32 4294901760, %v1598_v30 }
  0xe0   :  { %3813 = vmatmul.mubr.msk.f32.gmra.mxu1 %vm245_vm0, %v4563_v3  ;;  %v1528_v29 = vsub.f32 %v4735_v34, %v1527_v2  ;;  %v1558_v49 = vsub.f32 %v4775_v42, %v1557_v24  ;;  %v4890_v37 = vsel %vm209_vm1, 1.0, %v5559_v59 }
  0xe1   :  { %3779 = vmatmul.mubr.msk.f32.gmra.mxu0 %vm245_vm0, %v4502_v62  ;;  %3847 = vmatprep.mubr.msk.f32.mxu1 %vm245_vm0, %v4693_v15  ;;  %v1518_v62 = vsub.f32 %v4721_v28, %v1517_v40  ;;  %v194_v26 = vpop.permute.xlu1 %193  ;;  %v1443_v53 = vsel %vm245_vm0, %v4890_v37, 0 }
  0xe2   :  { %3781 = vmatprep.mubr.msk.f32.mxu0 %vm245_vm0, %v4535_v35  ;;  %v1419_v35 = vsel %vm245_vm0, %v4765_v21, 0  ;;  %v1529_v11 = vand.u32 4294901760, %v1528_v29  ;;  %v1559_v47 = vand.u32 4294901760, %v1558_v49  ;;  %vm210_vm2 = vcmp.eq.s32.totalorder %v194_v26, %v4356_v46 }
  0xe3   :  { %v1519_v13 = vand.u32 4294901760, %v1518_v62  ;;  %v4806_v56 = vsub.f32 %v1419_v35, %v1419_v35  ;;  %v1437_v62 = vsel %vm245_vm0, %v4857_v50, 0  ;;  %v1440_v46 = vsel %vm245_vm0, %v4882_v22, 0 }
  0xe4   :  { %3848 = vmatmul.mubr.msk.f32.vlgmr.msra.gmra.mxu1 %vm245_vm0, %v4703_v6  ;;  %v4910_v61 = vsel %vm210_vm2, 1.0, %v5559_v59  ;;  %v4916_v57 = vsub.f32 %v1440_v46, %v1440_v46 }
  0xe5   :  { %3782 = vmatmul.mubr.msk.f32.gmra.mxu0 %vm245_vm0, %v4532_v31  ;;  %3850 = vmatprep.mubr.msk.f32.mxu1 %vm245_vm0, %v4715_v5  ;;  %v1422_v31 = vsel %vm245_vm0, %v4778_v44, 0  ;;  %v1577_v1 = vand.u32 4294901760, %v4806_v56  ;;  %v1446_v51 = vsel %vm245_vm0, %v4910_v61, 0 }
  0xe6   :  { %3784 = vmatprep.mubr.msk.f32.mxu0 %vm245_vm0, %v4566_v7  ;;  %3900 = vmatpush3.msra.mxu1 %v4515_v14  ;;  %v1538_v7 = vsub.f32 %v4747_v45, %v1537_v52  ;;  %v4823_v38 = vsub.f32 %v1422_v31, %v1422_v31  ;;  %v1607_v31 = vand.u32 4294901760, %v4861_v20 }
  0xe7   :  { %3901 = vmatprep.subr.mxu1 %v4628_v12  ;;  %v1578_v4 = vsub.f32 %v4806_v56, %v1577_v1 }
  0xe8   :  { %3851 = vmatmul.mubr.msk.f32.gmra.mxu1 %vm245_vm0, %v4725_v32  ;;  %v1539_v0 = vand.u32 4294901760, %v1538_v7  ;;  %v1587_v19 = vand.u32 4294901760, %v4823_v38  ;;  %v1617_v7 = vand.u32 4294901760, %v4871_v43 }
  0xe9   :  { %3785 = vmatmul.mubr.msk.f32.gmra.mxu0 %vm245_vm0, %v4563_v3  ;;  %3853 = vmatprep.mubr.msk.f32.mxu1 %vm245_vm0, %v4739_v41  ;;  %v1567_v3 = vand.u32 4294901760, %v4800_v55  ;;  %v1579_v9 = vand.u32 4294901760, %v1578_v4 }
  0xea   :  { %3819 = vmatprep.mubr.f32.mxu0 %v1519_v13  ;;  %3902 = vmatpush3.msra.mxu1 %v4628_v12  ;;  %v4904_v13 = vsub.f32 %v1437_v62, %v1437_v62  ;;  %v1618_v26 = vsub.f32 %v4871_v43, %v1617_v7  ;;  %v1647_v62 = vand.u32 4294901760, %v4916_v57 }
  0xeb   :  { %3955 = vmatprep.subr.mxu1 %v4515_v14  ;;  %v1568_v25 = vsub.f32 %v4800_v55, %v1567_v3 }
  0xec   :  { %3854 = vmatmul.mubr.msk.f32.gmra.mxu1 %vm245_vm0, %v4752_v48 }
  0xed   :  { %3820 = vmatmul.mubr.f32.vlgmr.msra.gmra.mxu0 %v1529_v11  ;;  %3856 = vmatprep.mubr.msk.f32.mxu1 %vm245_vm0, %v4765_v21  ;;  %v1569_v29 = vand.u32 4294901760, %v1568_v25  ;;  %v1637_v25 = vand.u32 4294901760, %v4904_v13 }
  0xee   :  { %3872 = vmatpush3.msra.mxu0 %v4546_v16  ;;  %3822 = vmatprep.mubr.f32.mxu0 %v1539_v0  ;;  %v1434_v16 = vsel %vm245_vm0, %v4849_v8, 0  ;;  %v1608_v0 = vsub.f32 %v4861_v20, %v1607_v31 }
  0xef   :  { %3873 = vmatprep.subr.mxu0 %v4637_v17  ;;  %v4896_v35 = vsub.f32 %v1434_v16, %v1434_v16  ;;  %v4934_v16 = vsub.f32 %v1446_v51, %v1446_v51 }
  0xf0   :  { %3857 = vmatmul.mubr.msk.f32.gmra.mxu1 %vm245_vm0, %v4778_v44  ;;  %3874 = vmatpush3.msra.mxu0 %v4637_v17  ;;  %v1588_v17 = vsub.f32 %v4823_v38, %v1587_v19 }
  0xf1   :  { %3823 = vmatmul.mubr.f32.gmra.mxu0 %v1549_v58  ;;  %3859 = vmatprep.mubr.msk.f32.mxu1 %vm245_vm0, %v4786_v23  ;;  %v1627_v49 = vand.u32 4294901760, %v4896_v35  ;;  %v4924_v58 = vsub.f32 %v1443_v53, %v1443_v53  ;;  %v1667_v53 = vand.u32 4294901760, %v4934_v16 }
  0xf2   :  { %3825 = vmatprep.mubr.f32.mxu0 %v1559_v47  ;;  %3927 = vmatprep.subr.mxu0 %v4584_v39  ;;  %v1589_v11 = vand.u32 4294901760, %v1588_v17  ;;  %v1609_v47 = vand.u32 4294901760, %v1608_v0  ;;  %v1619_v17 = vand.u32 4294901760, %v1618_v26 }
  0xf3   :  { %v1628_v4 = vsub.f32 %v4896_v35, %v1627_v49  ;;  %v1657_v30 = vand.u32 4294901760, %v4924_v58  ;;  %v1668_v51 = vsub.f32 %v4934_v16, %v1667_v53 }
  0xf4   :  { %3860 = vmatmul.mubr.msk.f32.gmra.mxu1 %vm245_vm0, %v4817_v27 }
  0xf5   :  { %3826 = vmatmul.mubr.f32.gmra.mxu0 %v1569_v29  ;;  %3862 = vmatprep.mubr.msk.f32.mxu1 %vm245_vm0, %v4827_v60  ;;  %v1638_v29 = vsub.f32 %v4904_v13, %v1637_v25  ;;  %v1629_v46 = vand.u32 4294901760, %v1628_v4 }
  0xf6   :  { %3828 = vmatprep.mubr.f32.mxu0 %v1579_v9  ;;  %v1648_v9 = vsub.f32 %v4916_v57, %v1647_v62 }
  0xf8   :  { %3863 = vmatmul.mubr.msk.f32.gmra.mxu1 %vm245_vm0, %v4849_v8  ;;  %v1649_v0 = vand.u32 4294901760, %v1648_v9 }
  0xf9   :  { %3829 = vmatmul.mubr.f32.gmra.mxu0 %v1589_v11  ;;  %3865 = vmatprep.mubr.msk.f32.mxu1 %vm245_vm0, %v4857_v50  ;;  %v1639_v11 = vand.u32 4294901760, %v1638_v29 }
  0xfa   :  { %3831 = vmatprep.mubr.f32.mxu0 %v1599_v63  ;;  %v1658_v63 = vsub.f32 %v4924_v58, %v1657_v30 }
  0xfc   :  { %3866 = vmatmul.mubr.msk.f32.gmra.mxu1 %vm245_vm0, %v4882_v22  ;;  %v1659_v26 = vand.u32 4294901760, %v1658_v63 }
  0xfd   :  { %3832 = vmatmul.mubr.f32.gmra.mxu0 %v1609_v47  ;;  %3868 = vmatprep.mubr.msk.f32.mxu1 %vm245_vm0, %v4890_v37  ;;  %v1669_v47 = vand.u32 4294901760, %v1668_v51 }
  0xfe   :  { %3834 = vmatprep.mubr.f32.mxu0 %v1619_v17 }
 0x100   :  { %3869 = vmatmul.mubr.msk.f32.gmra.mxu1 %vm245_vm0, %v4910_v61 }
 0x101   :  { %3835 = vmatmul.mubr.f32.gmra.mxu0 %v1629_v46  ;;  %3903 = vmatprep.mubr.f32.mxu1 %v1517_v40 }
 0x102   :  { %3837 = vmatprep.mubr.f32.mxu0 %v1639_v11 }
 0x104   :  { %3904 = vmatmul.mubr.f32.vlgmr.msra.gmra.mxu1 %v1527_v2 }
 0x105   :  { %3838 = vmatmul.mubr.f32.gmra.mxu0 %v1649_v0  ;;  %3906 = vmatprep.mubr.f32.mxu1 %v1537_v52 }
 0x106   :  { %3840 = vmatprep.mubr.f32.mxu0 %v1659_v26  ;;  %3956 = vmatpush3.msra.mxu1 %v4515_v14 }
 0x107   :  { %3957 = vmatprep.subr.mxu1 %v4628_v12 }
 0x108   :  { %3907 = vmatmul.mubr.f32.gmra.mxu1 %v1547_v36 }
 0x109   :  { %3841 = vmatmul.mubr.f32.gmra.mxu0 %v1669_v47  ;;  %3909 = vmatprep.mubr.f32.mxu1 %v1557_v24 }
 0x10a   :  { %3875 = vmatprep.mubr.f32.mxu0 %v4721_v28  ;;  %3958 = vmatpush3.msra.mxu1 %v4628_v12 }
 0x10b   :  { %4018 = vmatprep.subr.mxu1 %v5559_v59 }
 0x10c   :  { %3910 = vmatmul.mubr.f32.gmra.mxu1 %v1567_v3 }
 0x10d   :  { %3876 = vmatmul.mubr.f32.vlgmr.msra.gmra.mxu0 %v4735_v34  ;;  %3912 = vmatprep.mubr.f32.mxu1 %v1577_v1 }
 0x10e   :  { %3928 = vmatpush3.msra.mxu0 %v4584_v39  ;;  %3878 = vmatprep.mubr.f32.mxu0 %v4747_v45 }
 0x10f   :  { %3929 = vmatprep.subr.mxu0 %v4644_v18 }
 0x110   :  { %3913 = vmatmul.mubr.f32.gmra.mxu1 %v1587_v19  ;;  %3930 = vmatpush3.msra.mxu0 %v4644_v18 }
 0x111   :  { %3879 = vmatmul.mubr.f32.gmra.mxu0 %v4762_v10  ;;  %3915 = vmatprep.mubr.f32.mxu1 %v1597_v33 }
 0x112   :  { %3881 = vmatprep.mubr.f32.mxu0 %v4775_v42  ;;  %3983 = vmatprep.subr.mxu0 %v5559_v59 }
 0x114   :  { %3916 = vmatmul.mubr.f32.gmra.mxu1 %v1607_v31 }
 0x115   :  { %3882 = vmatmul.mubr.f32.gmra.mxu0 %v4800_v55  ;;  %3918 = vmatprep.mubr.f32.mxu1 %v1617_v7 }
 0x116   :  { %3884 = vmatprep.mubr.f32.mxu0 %v4806_v56 }
 0x118   :  { %3919 = vmatmul.mubr.f32.gmra.mxu1 %v1627_v49 }
 0x119   :  { %3885 = vmatmul.mubr.f32.gmra.mxu0 %v4823_v38  ;;  %3921 = vmatprep.mubr.f32.mxu1 %v1637_v25 }
 0x11a   :  { %3887 = vmatprep.mubr.f32.mxu0 %v4833_v54 }
 0x11c   :  { %3922 = vmatmul.mubr.f32.gmra.mxu1 %v1647_v62 }
 0x11d   :  { %3888 = vmatmul.mubr.f32.gmra.mxu0 %v4861_v20  ;;  %3924 = vmatprep.mubr.f32.mxu1 %v1657_v30 }
 0x11e   :  { %3890 = vmatprep.mubr.f32.mxu0 %v4871_v43 }
 0x120   :  { %3925 = vmatmul.mubr.f32.gmra.mxu1 %v1667_v53 }
 0x121   :  { %3891 = vmatmul.mubr.f32.gmra.mxu0 %v4896_v35  ;;  %3959 = vmatprep.mubr.msk.f32.mxu1 %vm245_vm0, %v4693_v15 }
 0x122   :  { %3893 = vmatprep.mubr.f32.mxu0 %v4904_v13 }
 0x124   :  { %3960 = vmatmul.mubr.msk.f32.vlgmr.msra.gmra.mxu1 %vm245_vm0, %v4703_v6 }
 0x125   :  { %3894 = vmatmul.mubr.f32.gmra.mxu0 %v4916_v57  ;;  %3962 = vmatprep.mubr.msk.f32.mxu1 %vm245_vm0, %v4715_v5 }
 0x126   :  { %3896 = vmatprep.mubr.f32.mxu0 %v4924_v58 }
 0x128   :  { %3963 = vmatmul.mubr.msk.f32.gmra.mxu1 %vm245_vm0, %v4725_v32 }
 0x129   :  { %3897 = vmatmul.mubr.f32.gmra.mxu0 %v4934_v16  ;;  %3965 = vmatprep.mubr.msk.f32.mxu1 %vm245_vm0, %v4739_v41 }
 0x12a   :  { %3931 = vmatprep.mubr.msk.f32.mxu0 %vm245_vm0, %v4693_v15 }
 0x12c   :  { %3966 = vmatmul.mubr.msk.f32.gmra.mxu1 %vm245_vm0, %v4752_v48 }
 0x12d   :  { %3932 = vmatmul.mubr.msk.f32.vlgmr.msra.gmra.mxu0 %vm245_vm0, %v4703_v6  ;;  %3968 = vmatprep.mubr.msk.f32.mxu1 %vm245_vm0, %v4765_v21 }
 0x12e   :  { %3934 = vmatprep.mubr.msk.f32.mxu0 %vm245_vm0, %v4715_v5 }
 0x130   :  { %3969 = vmatmul.mubr.msk.f32.gmra.mxu1 %vm245_vm0, %v4778_v44 }
 0x131   :  { %3935 = vmatmul.mubr.msk.f32.gmra.mxu0 %vm245_vm0, %v4725_v32  ;;  %3971 = vmatprep.mubr.msk.f32.mxu1 %vm245_vm0, %v4786_v23 }
 0x132   :  { %3937 = vmatprep.mubr.msk.f32.mxu0 %vm245_vm0, %v4739_v41 }
 0x134   :  { %3972 = vmatmul.mubr.msk.f32.gmra.mxu1 %vm245_vm0, %v4817_v27 }
 0x135   :  { %3938 = vmatmul.mubr.msk.f32.gmra.mxu0 %vm245_vm0, %v4752_v48  ;;  %3974 = vmatprep.mubr.msk.f32.mxu1 %vm245_vm0, %v4827_v60 }
 0x136   :  { %3940 = vmatprep.mubr.msk.f32.mxu0 %vm245_vm0, %v4765_v21 }
 0x138   :  { %3975 = vmatmul.mubr.msk.f32.gmra.mxu1 %vm245_vm0, %v4849_v8 }
 0x139   :  { %3941 = vmatmul.mubr.msk.f32.gmra.mxu0 %vm245_vm0, %v4778_v44  ;;  %3977 = vmatprep.mubr.msk.f32.mxu1 %vm245_vm0, %v4857_v50 }
 0x13a   :  { %3943 = vmatprep.mubr.msk.f32.mxu0 %vm245_vm0, %v4786_v23 }
 0x13c   :  { %3978 = vmatmul.mubr.msk.f32.gmra.mxu1 %vm245_vm0, %v4882_v22 }
 0x13d   :  { %3944 = vmatmul.mubr.msk.f32.gmra.mxu0 %vm245_vm0, %v4817_v27  ;;  %3980 = vmatprep.mubr.msk.f32.mxu1 %vm245_vm0, %v4890_v37 }
 0x13e   :  { %3946 = vmatprep.mubr.msk.f32.mxu0 %vm245_vm0, %v4827_v60 }
 0x140   :  { %3981 = vmatmul.mubr.msk.f32.gmra.mxu1 %vm245_vm0, %v4910_v61 }
 0x141   :  { %3947 = vmatmul.mubr.msk.f32.gmra.mxu0 %vm245_vm0, %v4849_v8 }
 0x142   :  { %3949 = vmatprep.mubr.msk.f32.mxu0 %vm245_vm0, %v4857_v50 }
 0x144   :  { %v3681_v14 = vpop.f32.mrf.mxu1 }
 0x145   :  { %3950 = vmatmul.mubr.msk.f32.gmra.mxu0 %vm245_vm0, %v4882_v22 }
 0x146   :  { %v598_v39 = vpop.f32.mrf.mxu1  ;;  %3952 = vmatprep.mubr.msk.f32.mxu0 %vm245_vm0, %v4890_v37 }
 0x148   :  { %v3684_v12 = vpop.f32.mrf.mxu1 }
 0x149   :  { %3953 = vmatmul.mubr.msk.f32.gmra.mxu0 %vm245_vm0, %v4910_v61  ;;  %vm4201_vm0 = vmmov 0  }
 0x14a   :  { %v610_v18 = vpop.f32.mrf.mxu1  ;;  %4015 = vmatprep.mubr.msk.f32.mxu0 %vm4201_vm0, %v5559_v59  ;;  %4050 = vmatprep.mubr.msk.f32.mxu1 %vm4201_vm0, %v5559_v59 }
 0x14c   :  { %v3687_v15 = vpop.f32.mrf.mxu1 }
 0x14d   :  { %v3653_v6 = vpop.f32.mrf.mxu0 }
 0x14e   :  { %v605_v5 = vadd.f32 %v3681_v14, %v3653_v6  ;;  %v622_v28 = vpop.f32.mrf.mxu1 }
 0x14f   :  { %v367_v32 = vpop.f32.mrf.mxu0 }
 0x150   :  { %v599_v34 = vadd.f32 %v598_v39, %v367_v32  ;;  %v3690_v41 = vpop.f32.mrf.mxu1 }
 0x151   :  { %v3656_v40 = vpop.f32.mrf.mxu0 }
 0x152   :  { %v617_v45 = vadd.f32 %v3684_v12, %v3656_v40  ;;  %v634_v48 = vpop.f32.mrf.mxu1 }
 0x153   :  { %v387_v2 = vpop.f32.mrf.mxu0 }
 0x154   :  { %v611_v10 = vadd.f32 %v610_v18, %v387_v2  ;;  %v3693_v21 = vpop.f32.mrf.mxu1 }
 0x155   :  { %v3659_v42 = vpop.f32.mrf.mxu0 }
 0x156   :  { %v629_v44 = vadd.f32 %v3687_v15, %v3659_v42  ;;  %v646_v52 = vpop.f32.mrf.mxu1 }
 0x157   :  { %v407_v23 = vpop.f32.mrf.mxu0 }
 0x158   :  { %v623_v36 = vadd.f32 %v622_v28, %v407_v23  ;;  %v3696_v55 = vpop.f32.mrf.mxu1 }
 0x159   :  { %v3662_v56 = vpop.f32.mrf.mxu0 }
 0x15a   :  { %v641_v24 = vadd.f32 %v3690_v41, %v3662_v56  ;;  %v658_v27 = vpop.f32.mrf.mxu1 }
 0x15b   :  { %v427_v38 = vpop.f32.mrf.mxu0 }
 0x15c   :  { %v635_v60 = vadd.f32 %v634_v48, %v427_v38  ;;  %v3699_v54 = vpop.f32.mrf.mxu1 }
 0x15d   :  { %v3665_v3 = vpop.f32.mrf.mxu0 }
 0x15e   :  { %v653_v1 = vadd.f32 %v3693_v21, %v3665_v3  ;;  %v670_v8 = vpop.f32.mrf.mxu1 }
 0x15f   :  { %v447_v50 = vpop.f32.mrf.mxu0 }
 0x160   :  { %v647_v19 = vadd.f32 %v646_v52, %v447_v50  ;;  %v3702_v20 = vpop.f32.mrf.mxu1 }
 0x161   :  { %v3668_v33 = vpop.f32.mrf.mxu0 }
 0x162   :  { %v665_v43 = vadd.f32 %v3696_v55, %v3668_v33  ;;  %v682_v22 = vpop.f32.mrf.mxu1 }
 0x163   :  { %v467_v37 = vpop.f32.mrf.mxu0 }
 0x164   :  { %v659_v35 = vadd.f32 %v658_v27, %v467_v37  ;;  %v3737_v31 = vpop.f32.mrf.mxu1 }
 0x165   :  { %v3671_v13 = vpop.f32.mrf.mxu0 }
 0x166   :  { %v677_v7 = vadd.f32 %v3699_v54, %v3671_v13  ;;  %v944_v61 = vpop.f32.mrf.mxu1 }
 0x167   :  { %v487_v57 = vpop.f32.mrf.mxu0 }
 0x168   :  { %v671_v49 = vadd.f32 %v670_v8, %v487_v57  ;;  %v3740_v58 = vpop.f32.mrf.mxu1 }
 0x169   :  { %v3674_v25 = vpop.f32.mrf.mxu0 }
 0x16a   :  { %v689_v16 = vadd.f32 %v3702_v20, %v3674_v25  ;;  %v960_v4 = vpop.f32.mrf.mxu1 }
 0x16b   :  { %v507_v62 = vpop.f32.mrf.mxu0 }
 0x16c   :  { %v683_v17 = vadd.f32 %v682_v22, %v507_v62  ;;  %v3743_v29 = vpop.f32.mrf.mxu1 }
 0x16d   :  { %v3709_v30 = vpop.f32.mrf.mxu0 }
 0x16e   :  { %v772_v46 = vadd.f32 %v3709_v30, %v605_v5  ;;  %v976_v9 = vpop.f32.mrf.mxu1 }
 0x16f   :  { %v764_v53 = vpop.f32.mrf.mxu0 }
 0x170   :  { %v765_v11 = vadd.f32 %v764_v53, %v599_v34  ;;  %v3746_v63 = vpop.f32.mrf.mxu1  ;;  %v953_v0 = vadd.f32 %v3737_v31, %v772_v46 }
 0x171   :  { %v3712_v51 = vpop.f32.mrf.mxu0 }
 0x172   :  { %v786_v26 = vadd.f32 %v3712_v51, %v617_v45  ;;  %v992_v47 = vpop.f32.mrf.mxu1  ;;  %v945_v14 = vadd.f32 %v944_v61, %v765_v11 }
 0x173   :  { %v778_v39 = vpop.f32.mrf.mxu0 }
 0x174   :  { %v779_v12 = vadd.f32 %v778_v39, %v611_v10  ;;  %v3749_v18 = vpop.f32.mrf.mxu1  ;;  %v969_v15 = vadd.f32 %v3740_v58, %v786_v26 }
 0x175   :  { %v3715_v6 = vpop.f32.mrf.mxu0 }
 0x176   :  { %v800_v28 = vadd.f32 %v3715_v6, %v629_v44  ;;  %v1008_v32 = vpop.f32.mrf.mxu1  ;;  %v961_v41 = vadd.f32 %v960_v4, %v779_v12 }
 0x177   :  { %v792_v40 = vpop.f32.mrf.mxu0 }
 0x178   :  { %v793_v48 = vadd.f32 %v792_v40, %v623_v36  ;;  %v3752_v5 = vpop.f32.mrf.mxu1  ;;  %v985_v2 = vadd.f32 %v3743_v29, %v800_v28 }
 0x179   :  { %v3718_v21 = vpop.f32.mrf.mxu0 }
 0x17a   :  { %v814_v34 = vadd.f32 %v3718_v21, %v641_v24  ;;  %v1024_v42 = vpop.f32.mrf.mxu1  ;;  %v977_v52 = vadd.f32 %v976_v9, %v793_v48 }
 0x17b   :  { %v806_v23 = vpop.f32.mrf.mxu0 }
 0x17c   :  { %v807_v45 = vadd.f32 %v806_v23, %v635_v60  ;;  %v3755_v55 = vpop.f32.mrf.mxu1  ;;  %v1001_v56 = vadd.f32 %v3746_v63, %v814_v34 }
 0x17d   :  { %v3721_v27 = vpop.f32.mrf.mxu0 }
 0x17e   :  { %v828_v10 = vadd.f32 %v3721_v27, %v653_v1  ;;  %v1040_v38 = vpop.f32.mrf.mxu1  ;;  %v993_v54 = vadd.f32 %v992_v47, %v807_v45 }
 0x17f   :  { %v820_v3 = vpop.f32.mrf.mxu0 }
 0x180   :  { %v821_v44 = vadd.f32 %v820_v3, %v647_v19  ;;  %v3758_v8 = vpop.f32.mrf.mxu1  ;;  %v1017_v50 = vadd.f32 %v3749_v18, %v828_v10 }
 0x181   :  { %v3724_v20 = vpop.f32.mrf.mxu0 }
 0x182   :  { %v842_v36 = vadd.f32 %v3724_v20, %v665_v43  ;;  %v1056_v33 = vpop.f32.mrf.mxu1  ;;  %v1009_v22 = vadd.f32 %v1008_v32, %v821_v44 }
 0x183   :  { %v834_v37 = vpop.f32.mrf.mxu0 }
 0x184   :  { %v835_v24 = vadd.f32 %v834_v37, %v659_v35  ;;  %v3793_v31 = vpop.f32.mrf.mxu1  ;;  %v1033_v13 = vadd.f32 %v3752_v5, %v842_v36 }
 0x185   :  { %v3727_v61 = vpop.f32.mrf.mxu0 }
 0x186   :  { %v856_v60 = vadd.f32 %v3727_v61, %v677_v7  ;;  %v1304_v57 = vpop.f32.mrf.mxu1  ;;  %v1025_v58 = vadd.f32 %v1024_v42, %v835_v24 }
 0x187   :  { %v848_v25 = vpop.f32.mrf.mxu0 }
 0x188   :  { %v849_v1 = vadd.f32 %v848_v25, %v671_v49  ;;  %v3796_v4 = vpop.f32.mrf.mxu1  ;;  %v1049_v62 = vadd.f32 %v3755_v55, %v856_v60 }
 0x189   :  { %v3730_v29 = vpop.f32.mrf.mxu0 }
 0x18a   :  { %v870_v19 = vadd.f32 %v3730_v29, %v689_v16  ;;  %v1316_v30 = vpop.f32.mrf.mxu1  ;;  %v1041_v46 = vadd.f32 %v1040_v38, %v849_v1 }
 0x18b   :  { %v862_v9 = vpop.f32.mrf.mxu0 }
 0x18c   :  { %v863_v43 = vadd.f32 %v862_v9, %v683_v17  ;;  %v3799_v53 = vpop.f32.mrf.mxu1  ;;  %v1065_v11 = vadd.f32 %v3758_v8, %v870_v19 }
 0x18d   :  { %v3765_v63 = vpop.f32.mrf.mxu0 }
 0x18e   :  { %v1148_v35 = vadd.f32 %v3765_v63, %v953_v0  ;;  %v1328_v51 = vpop.f32.mrf.mxu1  ;;  %v1057_v26 = vadd.f32 %v1056_v33, %v863_v43 }
 0x18f   :  { %v1141_v47 = vpop.f32.mrf.mxu0 }
 0x190   :  { %v5060_v7 = vadd.f32 %v3793_v31, %v1148_v35  ;;  %v1142_v39 = vadd.f32 %v1141_v47, %v945_v14  ;;  %v3802_v12 = vpop.f32.mrf.mxu1 }
 0x191   :  { %v3768_v49 = vpop.f32.mrf.mxu0 }
 0x192   :  { %v5062_v18 = vadd.f32 %v1304_v57, %v1142_v39  ;;  %v1160_v6 = vadd.f32 %v3768_v49, %v969_v15  ;;  %v1340_v16 = vpop.f32.mrf.mxu1 }
 0x193   :  { %v1153_v28 = vpop.f32.mrf.mxu0 }
 0x194   :  { %v5064_v32 = vadd.f32 %v3796_v4, %v1160_v6  ;;  %v1154_v17 = vadd.f32 %v1153_v28, %v961_v41  ;;  %v3805_v40 = vpop.f32.mrf.mxu1 }
 0x195   :  { %v3771_v48 = vpop.f32.mrf.mxu0 }
 0x196   :  { %v5066_v5 = vadd.f32 %v1316_v30, %v1154_v17  ;;  %v1172_v0 = vadd.f32 %v3771_v48, %v985_v2  ;;  %v1352_v21 = vpop.f32.mrf.mxu1 }
 0x197   :  { %v1165_v34 = vpop.f32.mrf.mxu0 }
 0x198   :  { %v5068_v42 = vadd.f32 %v3799_v53, %v1172_v0  ;;  %v1166_v14 = vadd.f32 %v1165_v34, %v977_v52  ;;  %v3808_v23 = vpop.f32.mrf.mxu1 }
 0x199   :  { %v3774_v45 = vpop.f32.mrf.mxu0 }
 0x19a   :  { %v5070_v55 = vadd.f32 %v1328_v51, %v1166_v14  ;;  %v1184_v15 = vadd.f32 %v3774_v45, %v1001_v56  ;;  %v1364_v27 = vpop.f32.mrf.mxu1 }
 0x19b   :  { %v1177_v10 = vpop.f32.mrf.mxu0 }
 0x19c   :  { %v5072_v38 = vadd.f32 %v3802_v12, %v1184_v15  ;;  %v1178_v41 = vadd.f32 %v1177_v10, %v993_v54  ;;  %v3811_v3 = vpop.f32.mrf.mxu1 }
 0x19d   :  { %v3777_v44 = vpop.f32.mrf.mxu0 }
 0x19e   :  { %v5074_v8 = vadd.f32 %v1340_v16, %v1178_v41  ;;  %v1196_v2 = vadd.f32 %v3777_v44, %v1017_v50  ;;  %v1376_v20 = vpop.f32.mrf.mxu1 }
 0x19f   :  { %v1189_v36 = vpop.f32.mrf.mxu0 }
 0x1a0   :  { %v5076_v33 = vadd.f32 %v3805_v40, %v1196_v2  ;;  %v1190_v52 = vadd.f32 %v1189_v36, %v1009_v22  ;;  %v3814_v37 = vpop.f32.mrf.mxu1 }
 0x1a1   :  { %v3780_v24 = vpop.f32.mrf.mxu0 }
 0x1a2   :  { %v5078_v31 = vadd.f32 %v1352_v21, %v1190_v52  ;;  %v1208_v56 = vadd.f32 %v3780_v24, %v1033_v13  ;;  %v1388_v61 = vpop.f32.mrf.mxu1 }
 0x1a3   :  { %v1201_v60 = vpop.f32.mrf.mxu0 }
 0x1a4   :  { %v5080_v57 = vadd.f32 %v3808_v23, %v1208_v56  ;;  %v1202_v54 = vadd.f32 %v1201_v60, %v1025_v58  ;;  %v3849_v25 = vpop.f32.mrf.mxu1 }
 0x1a5   :  { %v3783_v1 = vpop.f32.mrf.mxu0 }
 0x1a6   :  { %v5082_v4 = vadd.f32 %v1364_v27, %v1202_v54  ;;  %v1220_v50 = vadd.f32 %v3783_v1, %v1049_v62  ;;  %v1752_v29 = vpop.f32.mrf.mxu1 }
 0x1a7   :  { %v1213_v19 = vpop.f32.mrf.mxu0 }
 0x1a8   :  { %v5084_v30 = vadd.f32 %v3811_v3, %v1220_v50  ;;  %v1214_v22 = vadd.f32 %v1213_v19, %v1041_v46  ;;  %v3852_v9 = vpop.f32.mrf.mxu1 }
 0x1a9   :  { %v3786_v43 = vpop.f32.mrf.mxu0 }
 0x1aa   :  { %v5086_v53 = vadd.f32 %v1376_v20, %v1214_v22  ;;  %v1232_v13 = vadd.f32 %v3786_v43, %v1065_v11  ;;  %v1764_v63 = vpop.f32.mrf.mxu1 }
 0x1ab   :  { %v1225_v35 = vpop.f32.mrf.mxu0 }
 0x1ac   :  { %5560 = vst [vmem:[#allocation2_spill] sm:$0xff] %v5086_v53  ;;  %v5088_v51 = vadd.f32 %v3814_v37, %v1232_v13  ;;  %v1226_v58 = vadd.f32 %v1225_v35, %v1057_v26  ;;  %v3855_v47 = vpop.f32.mrf.mxu1 }
 0x1ad   :  { %v3821_v39 = vpop.f32.mrf.mxu0 }
 0x1ae   :  { %5561 = vst [vmem:[#allocation3_spill] sm:$0xff] %v5088_v51  ;;  %v5090_v12 = vadd.f32 %v1388_v61, %v1226_v58  ;;  %v1759_v62 = vadd.f32 %v3849_v25, %v3821_v39  ;;  %v1776_v49 = vpop.f32.mrf.mxu1 }
 0x1af   :  { %v1521_v6 = vpop.f32.mrf.mxu0 }
 0x1b0   :  { %5562 = vst [vmem:[#allocation4_spill] sm:$0xff] %v5090_v12  ;;  %v1753_v16 = vadd.f32 %v1752_v29, %v1521_v6  ;;  %v3858_v28 = vpop.f32.mrf.mxu1 }
 0x1b1   :  { %v3824_v46 = vpop.f32.mrf.mxu0 }
 0x1b2   :  { %v1771_v17 = vadd.f32 %v3852_v9, %v3824_v46  ;;  %v1788_v40 = vpop.f32.mrf.mxu1 }
 0x1b3   :  { %v1541_v48 = vpop.f32.mrf.mxu0 }
 0x1b4   :  { %v1765_v0 = vadd.f32 %v1764_v63, %v1541_v48  ;;  %v3861_v11 = vpop.f32.mrf.mxu1 }
 0x1b5   :  { %v3827_v21 = vpop.f32.mrf.mxu0 }
 0x1b6   :  { %v1783_v34 = vadd.f32 %v3855_v47, %v3827_v21  ;;  %v1800_v14 = vpop.f32.mrf.mxu1 }
 0x1b7   :  { %v1561_v23 = vpop.f32.mrf.mxu0 }
 0x1b8   :  { %v1777_v26 = vadd.f32 %v1776_v49, %v1561_v23  ;;  %v3864_v45 = vpop.f32.mrf.mxu1 }
 0x1b9   :  { %v3830_v15 = vpop.f32.mrf.mxu0 }
 0x1ba   :  { %v1795_v27 = vadd.f32 %v3858_v28, %v3830_v15  ;;  %v1812_v10 = vpop.f32.mrf.mxu1 }
 0x1bb   :  { %v1581_v41 = vpop.f32.mrf.mxu0 }
 0x1bc   :  { %v1789_v3 = vadd.f32 %v1788_v40, %v1581_v41  ;;  %v3867_v44 = vpop.f32.mrf.mxu1 }
 0x1bd   :  { %v3833_v2 = vpop.f32.mrf.mxu0 }
 0x1be   :  { %v1807_v20 = vadd.f32 %v3861_v11, %v3833_v2  ;;  %v1824_v36 = vpop.f32.mrf.mxu1 }
 0x1bf   :  { %v1601_v52 = vpop.f32.mrf.mxu0 }
 0x1c0   :  { %v1801_v37 = vadd.f32 %v1800_v14, %v1601_v52  ;;  %v5092_v24 = vpop.f32.mrf.mxu1 }
 0x1c1   :  { %v3836_v56 = vpop.f32.mrf.mxu0 }
 0x1c2   :  { %v5094_v61 = vadd.f32 %v3864_v45, %v3836_v56  ;;  %v5096_v60 = vpop.f32.mrf.mxu1 }
 0x1c3   :  { %v1621_v54 = vpop.f32.mrf.mxu0 }
 0x1c4   :  { %v5098_v25 = vadd.f32 %v1812_v10, %v1621_v54  ;;  %v3905_v1 = vpop.f32.mrf.mxu1 }
 0x1c5   :  { %v3839_v50 = vpop.f32.mrf.mxu0 }
 0x1c6   :  { %v5100_v29 = vadd.f32 %v3867_v44, %v3839_v50  ;;  %v2098_v19 = vpop.f32.mrf.mxu1 }
 0x1c7   :  { %v1641_v22 = vpop.f32.mrf.mxu0 }
 0x1c8   :  { %v5102_v9 = vadd.f32 %v1824_v36, %v1641_v22  ;;  %v3908_v43 = vpop.f32.mrf.mxu1 }
 0x1c9   :  { %v5104_v13 = vpop.f32.mrf.mxu0 }
 0x1ca   :  { %v2114_v63 = vpop.f32.mrf.mxu1 }
 0x1cb   :  { %v5106_v35 = vpop.f32.mrf.mxu0 }
 0x1cc   :  { %v3911_v58 = vpop.f32.mrf.mxu1 }
 0x1cd   :  { %v3877_v47 = vpop.f32.mrf.mxu0 }
 0x1ce   :  { %v1926_v39 = vadd.f32 %v3877_v47, %v1759_v62  ;;  %v2130_v49 = vpop.f32.mrf.mxu1 }
 0x1cf   :  { %v1918_v6 = vpop.f32.mrf.mxu0 }
 0x1d0   :  { %v1919_v28 = vadd.f32 %v1918_v6, %v1753_v16  ;;  %v3914_v46 = vpop.f32.mrf.mxu1  ;;  %v2107_v40 = vadd.f32 %v3905_v1, %v1926_v39 }
 0x1d1   :  { %v3880_v48 = vpop.f32.mrf.mxu0 }
 0x1d2   :  { %v1940_v11 = vadd.f32 %v3880_v48, %v1771_v17  ;;  %v2146_v21 = vpop.f32.mrf.mxu1  ;;  %v2099_v14 = vadd.f32 %v2098_v19, %v1919_v28 }
 0x1d3   :  { %v1932_v23 = vpop.f32.mrf.mxu0 }
 0x1d4   :  { %v1933_v45 = vadd.f32 %v1932_v23, %v1765_v0  ;;  %v3917_v15 = vpop.f32.mrf.mxu1  ;;  %v2123_v62 = vadd.f32 %v3908_v43, %v1940_v11 }
 0x1d5   :  { %v3883_v10 = vpop.f32.mrf.mxu0 }
 0x1d6   :  { %v1954_v41 = vadd.f32 %v3883_v10, %v1783_v34  ;;  %v2162_v16 = vpop.f32.mrf.mxu1  ;;  %v2115_v44 = vadd.f32 %v2114_v63, %v1933_v45 }
 0x1d7   :  { %v1946_v2 = vpop.f32.mrf.mxu0 }
 0x1d8   :  { %v1947_v36 = vadd.f32 %v1946_v2, %v1777_v26  ;;  %v5112_v52 = vpop.f32.mrf.mxu1  ;;  %v2139_v56 = vadd.f32 %v3911_v58, %v1954_v41 }
 0x1d9   :  { %v3886_v54 = vpop.f32.mrf.mxu0 }
 0x1da   :  { %v1968_v1 = vadd.f32 %v3886_v54, %v1795_v27  ;;  %v5114_v50 = vpop.f32.mrf.mxu1  ;;  %v2131_v17 = vadd.f32 %v2130_v49, %v1947_v36 }
 0x1db   :  { %v1960_v22 = vpop.f32.mrf.mxu0 }
 0x1dc   :  { %v1961_v19 = vadd.f32 %v1960_v22, %v1789_v3  ;;  %v5116_v47 = vpop.f32.mrf.mxu1  ;;  %v2155_v0 = vadd.f32 %v3914_v46, %v1968_v1 }
 0x1dd   :  { %v3889_v43 = vpop.f32.mrf.mxu0 }
 0x1de   :  { %v1982_v39 = vadd.f32 %v3889_v43, %v1807_v20  ;;  %v5118_v34 = vpop.f32.mrf.mxu1  ;;  %v2147_v63 = vadd.f32 %v2146_v21, %v1961_v19 }
 0x1df   :  { %v1974_v6 = vpop.f32.mrf.mxu0 }
 0x1e0   :  { %v1975_v26 = vadd.f32 %v1974_v6, %v1801_v37  ;;  %v5120_v28 = vpop.f32.mrf.mxu1  ;;  %v2171_v58 = vadd.f32 %v3917_v15, %v1982_v39 }
 0x1e1   :  { %v3892_v48 = vpop.f32.mrf.mxu0 }
 0x1e2   :  { %v5122_v27 = vpop.f32.mrf.mxu1  ;;  %v2163_v11 = vadd.f32 %v2162_v16, %v1975_v26 }
 0x1e3   :  { %5563 = vst [vmem:[#allocation5_spill] sm:$0xff] %v5122_v27  ;;  %v1988_v49 = vpop.f32.mrf.mxu0 }
 0x1e4   :  { %v3961_v23 = vpop.f32.mrf.mxu1 }
 0x1e5   :  { %v3895_v3 = vpop.f32.mrf.mxu0 }
 0x1e6   :  { %v2458_v45 = vpop.f32.mrf.mxu1 }
 0x1e7   :  { %v2002_v10 = vpop.f32.mrf.mxu0 }
 0x1e8   :  { %v3964_v46 = vpop.f32.mrf.mxu1 }
 0x1e9   :  { %v5124_v41 = vpop.f32.mrf.mxu0 }
 0x1ea   :  { %v2470_v20 = vpop.f32.mrf.mxu1 }
 0x1eb   :  { %v5126_v2 = vpop.f32.mrf.mxu0 }
 0x1ec   :  { %v3967_v21 = vpop.f32.mrf.mxu1 }
 0x1ed   :  { %v3933_v37 = vpop.f32.mrf.mxu0 }
 0x1ee   :  { %v2302_v36 = vadd.f32 %v3933_v37, %v2107_v40  ;;  %v2482_v54 = vpop.f32.mrf.mxu1 }
 0x1ef   :  { %v2295_v15 = vpop.f32.mrf.mxu0 }
 0x1f0   :  { %v2465_v1 = vadd.f32 %v3961_v23, %v2302_v36  ;;  %v2296_v22 = vadd.f32 %v2295_v15, %v2099_v14  ;;  %v3970_v19 = vpop.f32.mrf.mxu1 }
 0x1f1   :  { %v3936_v16 = vpop.f32.mrf.mxu0 }
 0x1f2   :  { %v5129_v43 = vmul.f32 %v2465_v1, %v5060_v7  ;;  %v2459_v39 = vadd.f32 %v2458_v45, %v2296_v22  ;;  %v2314_v6 = vadd.f32 %v3936_v16, %v2123_v62  ;;  %v2494_v26 = vpop.f32.mrf.mxu1 }
 0x1f3   :  { %v2307_v59 = vpop.f32.mrf.mxu0 }
 0x1f4   :  { %v5132_v12 = vmul.f32 %v2459_v39, %v5062_v18  ;;  %v2477_v51 = vadd.f32 %v3964_v46, %v2314_v6  ;;  %v2308_v53 = vadd.f32 %v2307_v59, %v2115_v44  ;;  %v3973_v27 = vpop.f32.mrf.mxu1 }
 0x1f5   :  { %v3939_v40 = vpop.f32.mrf.mxu0 }
 0x1f6   :  { %v5135_v37 = vmul.f32 %v2477_v51, %v5064_v32  ;;  %v2471_v14 = vadd.f32 %v2470_v20, %v2308_v53  ;;  %v2506_v23 = vpop.f32.mrf.mxu1  ;;  %v2326_v36 = vadd.f32 %v3939_v40, %v2139_v56  ;;  %v1996_v32 = vadd.f32 %v3892_v48, %v5094_v61 }
 0x1f7   :  { %v2319_v15 = vpop.f32.mrf.mxu0 }
 0x1f8   :  { %v5138_v7 = vmul.f32 %v2471_v14, %v5066_v5  ;;  %v2320_v62 = vadd.f32 %v2319_v15, %v2131_v17  ;;  %v2489_v45 = vadd.f32 %v3967_v21, %v2326_v36  ;;  %v3976_v1 = vpop.f32.mrf.mxu1  ;;  %v1989_v17 = vadd.f32 %v1988_v49, %v5098_v25 }
 0x1f9   :  { %v3942_v22 = vpop.f32.mrf.mxu0 }
 0x1fa   :  { %v2483_v18 = vadd.f32 %v2482_v54, %v2320_v62  ;;  %v2338_v16 = vadd.f32 %v3942_v22, %v2155_v0  ;;  %v5141_v59 = vmul.f32 %v2489_v45, %v5068_v42  ;;  %v2518_v46 = vpop.f32.mrf.mxu1  ;;  %v2010_v42 = vadd.f32 %v3895_v3, %v5100_v29  ;;  %v5564_v45 = vld [vmem:[#allocation5_spill] sm:$0xff]  ;;  %v5565_v22 = vld [vmem:[#allocation2_spill] sm:$0xff] }
 0x1fb   :  { %v2331_v44 = vpop.f32.mrf.mxu0  ;;  %v1843_v29 = vadd.f32 %v5092_v24, %v5104_v13 }
 0x1fc   :  { %v5145_v53 = vmul.f32 %v2483_v18, %v5070_v55  ;;  %v2501_v51 = vadd.f32 %v3970_v19, %v2338_v16  ;;  %v2332_v56 = vadd.f32 %v2331_v44, %v2147_v63  ;;  %v2187_v55 = vadd.f32 %v5112_v52, %v1996_v32  ;;  %v3979_v48 = vpop.f32.mrf.mxu1 }
 0x1fd   :  { %v3945_v5 = vpop.f32.mrf.mxu0  ;;  %v2003_v63 = vadd.f32 %v2002_v10, %v5102_v9  ;;  %v2203_v9 = vadd.f32 %v5116_v47, %v2010_v42 }
 0x1fe   :  { %v5149_v20 = vmul.f32 %v2501_v51, %v5072_v38  ;;  %v2495_v21 = vadd.f32 %v2494_v26, %v2332_v56  ;;  %v2350_v0 = vadd.f32 %v3945_v5, %v2171_v58  ;;  %v2179_v58 = vadd.f32 %v5114_v50, %v1989_v17  ;;  %v2530_v10 = vpop.f32.mrf.mxu1  ;;  %v5567_v56 = vld [vmem:[#allocation4_spill] sm:$0xff] }
 0x1ff   :  { %v2343_v54 = vpop.f32.mrf.mxu0  ;;  %v2195_v50 = vadd.f32 %v5118_v34, %v2003_v63 }
 0x200   :  { %v5153_v39 = vmul.f32 %v2495_v21, %v5074_v8  ;;  %v2513_v61 = vadd.f32 %v3973_v27, %v2350_v0  ;;  %v2344_v19 = vadd.f32 %v2343_v54, %v2163_v11  ;;  %v1837_v27 = vadd.f32 %v5096_v60, %v5106_v35  ;;  %v3982_v36 = vpop.f32.mrf.mxu1 }
 0x201   :  { %v3948_v6 = vpop.f32.mrf.mxu0  ;;  %v2024_v11 = vadd.f32 %v5124_v41, %v1843_v29  ;;  %v5568_v0 = vmov 0.0  }
 0x202   :  { %v5158_v25 = vmul.f32 %v2513_v61, %v5076_v33  ;;  %v2362_v38 = vadd.f32 %v3948_v6, %v2187_v55  ;;  %v2507_v49 = vadd.f32 %v2506_v23, %v2344_v19  ;;  %v2017_v24 = vadd.f32 %v5126_v2, %v1837_v27  ;;  %v2542_v16 = vpop.f32.mrf.mxu1 }
 0x203   :  { %v2355_v8 = vpop.f32.mrf.mxu0  ;;  %v2219_v41 = vadd.f32 %v5120_v28, %v2024_v11 }
 0x204   :  { %v2525_v52 = vadd.f32 %v3976_v1, %v2362_v38  ;;  %v2356_v3 = vadd.f32 %v2355_v8, %v2179_v58  ;;  %v5168_v33 = vmul.f32 %v2507_v49, %v5078_v31  ;;  %v2211_v34 = vadd.f32 %v5564_v45, %v2017_v24 }
 0x205   :  { %v3951_v26 = vpop.f32.mrf.mxu0 }
 0x206   :  { %v2563_v13 = vmul.f32 %v2525_v52, %v5080_v57  ;;  %v2519_v40 = vadd.f32 %v2518_v46, %v2356_v3  ;;  %v2374_v14 = vadd.f32 %v3951_v26, %v2203_v9  ;;  %v5229_v3 = vand.u32 4294901760, %v5158_v25 }
 0x207   :  { %v2367_v60 = vpop.f32.mrf.mxu0  ;;  %v5248_v24 = vand.u32 4294901760, %v5168_v33 }
 0x208   :  { %v2562_v35 = vmul.f32 %v2519_v40, %v5082_v4  ;;  %v2537_v23 = vadd.f32 %v3979_v48, %v2374_v14  ;;  %v2368_v47 = vadd.f32 %v2367_v60, %v2195_v50  ;;  %v5566_v4 = vld [vmem:[#allocation3_spill] sm:$0xff]  ;;  %v5205_v48 = vand.u32 4294901760, %v2563_v13 }
 0x209   :  { %v3954_v15 = vpop.f32.mrf.mxu0  ;;  %v5243_v50 = vsub.f32 %v5158_v25, %v5229_v3  ;;  %v5256_v25 = vand.u32 4294901760, %v5149_v20  ;;  %v5262_v60 = vsub.f32 %v5168_v33, %v5248_v24  ;;  %v5276_v33 = vand.u32 4294901760, %v5153_v39 }
 0x20a   :  { %v2565_v31 = vmul.f32 %v2537_v23, %v5084_v30  ;;  %v2531_v62 = vadd.f32 %v2530_v10, %v2368_v47  ;;  %v2386_v1 = vadd.f32 %v3954_v15, %v2219_v41  ;;  %v5217_v29 = vsub.f32 %v2563_v13, %v5205_v48 }
 0x20b   :  { %v2379_v2 = vpop.f32.mrf.mxu0  ;;  %v5221_v49 = vand.u32 4294901760, %v2562_v35  ;;  %v2699_v47 = vand.u32 4294901760, %v5243_v50 }
 0x20c   :  { %v2564_v57 = vmul.f32 %v2531_v62, %v5565_v22  ;;  %v2380_v18 = vadd.f32 %v2379_v2, %v2211_v34  ;;  %v2549_v44 = vadd.f32 %v3982_v36, %v2386_v1  ;;  %v5180_v5 = vand.u32 4294901760, %v2565_v31 }
 0x20d   :  { %v5234_v9 = vsub.f32 %v2562_v35, %v5221_v49  ;;  %v2685_v26 = vand.u32 4294901760, %v5217_v29  ;;  %v5271_v36 = vsub.f32 %v5149_v20, %v5256_v25  ;;  %v2700_v15 = vsub.f32 %v5243_v50, %v2699_v47 }
 0x20e   :  { %v2543_v32 = vadd.f32 %v2542_v16, %v2380_v18  ;;  %v2567_v51 = vmul.f32 %v2549_v44, %v5566_v4  ;;  %v5195_v54 = vsub.f32 %v2565_v31, %v5180_v5  ;;  %v5197_v42 = vand.u32 4294901760, %v2564_v57 }
 0x20f   :  { %v2686_v40 = vsub.f32 %v5217_v29, %v2685_v26  ;;  %v2692_v14 = vand.u32 4294901760, %v5234_v9  ;;  %v2706_v31 = vand.u32 4294901760, %v5262_v60  ;;  %v5284_v20 = vand.u32 4294901760, %v5141_v59 }
 0x210   :  { %v2566_v46 = vmul.f32 %v2543_v32, %v5567_v56  ;;  %v5182_v28 = vand.u32 4294901760, %v2567_v51  ;;  %v5209_v19 = vsub.f32 %v2564_v57, %v5197_v42  ;;  %v2671_v58 = vand.u32 4294901760, %v5195_v54 }
 0x211   :  { %v2687_v35 = vand.u32 4294901760, %v2686_v40  ;;  %v2693_v23 = vsub.f32 %v5234_v9, %v2692_v14  ;;  %v5290_v62 = vsub.f32 %v5153_v39, %v5276_v33  ;;  %v2701_v45 = vand.u32 4294901760, %v2700_v15 }
 0x212   :  { %v5184_v30 = vand.u32 4294901760, %v2566_v46  ;;  %v5187_v17 = vsub.f32 %v2567_v51, %v5182_v28  ;;  %3984 = vmatpush3.xpose.msra.mxu0 %v5182_v28  ;;  %v2672_v27 = vsub.f32 %v5195_v54, %v2671_v58  ;;  %v2678_v52 = vand.u32 4294901760, %v5209_v19 }
 0x213   :  { %3985 = vmatprep.subr.mxu0 %v5568_v0  ;;  %v2694_v41 = vand.u32 4294901760, %v2693_v23  ;;  %v2707_v34 = vsub.f32 %v5262_v60, %v2706_v31  ;;  %v2713_v1 = vand.u32 4294901760, %v5271_v36  ;;  %v5298_v2 = vand.u32 4294901760, %v5145_v53 }
 0x214   :  { %v5191_v21 = vsub.f32 %v2566_v46, %v5184_v30  ;;  %v2657_v61 = vand.u32 4294901760, %v5187_v17  ;;  %v2673_v11 = vand.u32 4294901760, %v2672_v27  ;;  %v2679_v10 = vsub.f32 %v5209_v19, %v2678_v52 }
 0x215   :  { %v5304_v39 = vsub.f32 %v5141_v59, %v5284_v20  ;;  %v2708_v22 = vand.u32 4294901760, %v2707_v34  ;;  %v2714_v57 = vsub.f32 %v5271_v36, %v2713_v1  ;;  %v2720_v18 = vand.u32 4294901760, %v5290_v62 }
 0x216   :  { %v2664_v55 = vand.u32 4294901760, %v5191_v21  ;;  %3986 = vmatpush3.xpose.msra.mxu0 %v5184_v30  ;;  %v2658_v63 = vsub.f32 %v5187_v17, %v2657_v61  ;;  %v2680_v13 = vand.u32 4294901760, %v2679_v10  ;;  %v5312_v16 = vand.u32 4294901760, %v5135_v37 }
 0x217   :  { %3987 = vmatprep.subr.mxu0 %v5568_v0  ;;  %v5318_v59 = vsub.f32 %v5145_v53, %v5298_v2  ;;  %v2715_v44 = vand.u32 4294901760, %v2714_v57  ;;  %v2721_v32 = vsub.f32 %v5290_v62, %v2720_v18  ;;  %v2727_v4 = vand.u32 4294901760, %v5304_v39 }
 0x218   :  { %v2659_v6 = vand.u32 4294901760, %v2658_v63  ;;  %v2665_v38 = vsub.f32 %v5191_v21, %v2664_v55  ;;  %v5327_v51 = vsub.f32 %v5135_v37, %v5312_v16  ;;  %v5332_v53 = vand.u32 4294901760, %v5138_v7 }
 0x219   :  { %v2722_v56 = vand.u32 4294901760, %v2721_v32  ;;  %v2728_v46 = vsub.f32 %v5304_v39, %v2727_v4  ;;  %v2734_v63 = vand.u32 4294901760, %v5318_v59  ;;  %v5340_v37 = vand.u32 4294901760, %v5129_v43 }
 0x21a   :  { %3988 = vmatpush3.xpose.msra.mxu0 %v5180_v5  ;;  %4019 = vmatpush3.xpose.msra.mxu1 %v2659_v6  ;;  %v2666_v8 = vand.u32 4294901760, %v2665_v38  ;;  %v5346_v6 = vsub.f32 %v5138_v7, %v5332_v53  ;;  %v2741_v27 = vand.u32 4294901760, %v5327_v51  ;;  %v5360_v7 = vand.u32 4294901760, %v5132_v12 }
 0x21b   :  { %3989 = vmatprep.subr.mxu0 %v5568_v0  ;;  %4020 = vmatprep.subr.mxu1 %v5568_v0  ;;  %v2729_v38 = vand.u32 4294901760, %v2728_v46 }
 0x21c   :  { %v2748_v40 = vand.u32 4294901760, %v5346_v6 }
 0x21e   :  { %3990 = vmatpush3.xpose.msra.mxu0 %v5197_v42  ;;  %4021 = vmatpush3.xpose.msra.mxu1 %v2666_v8  ;;  %v2735_v8 = vsub.f32 %v5318_v59, %v2734_v63  ;;  %v2749_v23 = vsub.f32 %v5346_v6, %v2748_v40 }
 0x21f   :  { %3991 = vmatprep.subr.mxu0 %v5568_v0  ;;  %4022 = vmatprep.subr.mxu1 %v5568_v0 }
 0x220   :  { %v2736_v10 = vand.u32 4294901760, %v2735_v8  ;;  %v2750_v15 = vand.u32 4294901760, %v2749_v23 }
 0x222   :  { %3992 = vmatpush3.xpose.msra.mxu0 %v5205_v48  ;;  %4023 = vmatpush3.xpose.msra.mxu1 %v2673_v11  ;;  %v5355_v11 = vsub.f32 %v5129_v43, %v5340_v37  ;;  %v5371_v43 = vsub.f32 %v5132_v12, %v5360_v7 }
 0x223   :  { %3993 = vmatprep.subr.mxu0 %v5568_v0  ;;  %4024 = vmatprep.subr.mxu1 %v5568_v0 }
 0x226   :  { %3994 = vmatpush3.xpose.msra.mxu0 %v5221_v49  ;;  %4025 = vmatpush3.xpose.msra.mxu1 %v2680_v13  ;;  %v2742_v13 = vsub.f32 %v5327_v51, %v2741_v27 }
 0x227   :  { %3995 = vmatprep.subr.mxu0 %v5568_v0  ;;  %4026 = vmatprep.subr.mxu1 %v5568_v0 }
 0x22a   :  { %3996 = vmatpush3.xpose.msra.mxu0 %v5229_v3  ;;  %4027 = vmatpush3.xpose.msra.mxu1 %v2687_v35  ;;  %v2743_v35 = vand.u32 4294901760, %v2742_v13 }
 0x22b   :  { %3997 = vmatprep.subr.mxu0 %v5568_v0  ;;  %4028 = vmatprep.subr.mxu1 %v5568_v0 }
 0x22e   :  { %3998 = vmatpush3.xpose.msra.mxu0 %v5248_v24  ;;  %4029 = vmatpush3.xpose.msra.mxu1 %v2694_v41  ;;  %v2755_v41 = vand.u32 4294901760, %v5355_v11 }
 0x22f   :  { %3999 = vmatprep.subr.mxu0 %v5568_v0  ;;  %4030 = vmatprep.subr.mxu1 %v5568_v0 }
 0x230   :  { %v2756_v12 = vsub.f32 %v5355_v11, %v2755_v41 }
 0x232   :  { %4000 = vmatpush3.xpose.msra.mxu0 %v5256_v25  ;;  %4031 = vmatpush3.xpose.msra.mxu1 %v2701_v45  ;;  %v2762_v45 = vand.u32 4294901760, %v5371_v43  ;;  %v2757_v34 = vand.u32 4294901760, %v2756_v12 }
 0x233   :  { %4001 = vmatprep.subr.mxu0 %v5568_v0  ;;  %4032 = vmatprep.subr.mxu1 %v5568_v0 }
 0x236   :  { %4002 = vmatpush3.xpose.msra.mxu0 %v5276_v33  ;;  %4033 = vmatpush3.xpose.msra.mxu1 %v2708_v22  ;;  %v2763_v22 = vsub.f32 %v5371_v43, %v2762_v45 }
 0x237   :  { %4003 = vmatprep.subr.mxu0 %v5568_v0  ;;  %4034 = vmatprep.subr.mxu1 %v5568_v0 }
 0x238   :  { %v2764_v57 = vand.u32 4294901760, %v2763_v22 }
 0x23a   :  { %4004 = vmatpush3.xpose.msra.mxu0 %v5284_v20  ;;  %4035 = vmatpush3.xpose.msra.mxu1 %v2715_v44  ;;  %v4202_v44 = vmov 1.0  }
 0x23b   :  { %4005 = vmatprep.subr.mxu0 %v5568_v0  ;;  %4036 = vmatprep.subr.mxu1 %v5568_v0 }
 0x23e   :  { %4006 = vmatpush3.xpose.msra.mxu0 %v5298_v2  ;;  %4037 = vmatpush3.xpose.msra.mxu1 %v2722_v56 }
 0x23f   :  { %4007 = vmatprep.subr.mxu0 %v5568_v0  ;;  %4038 = vmatprep.subr.mxu1 %v5568_v0 }
 0x242   :  { %4008 = vmatpush3.xpose.msra.mxu0 %v5312_v16  ;;  %4039 = vmatpush3.xpose.msra.mxu1 %v2729_v38 }
 0x243   :  { %4009 = vmatprep.subr.mxu0 %v5568_v0  ;;  %4040 = vmatprep.subr.mxu1 %v5568_v0 }
 0x246   :  { %4010 = vmatpush3.xpose.msra.mxu0 %v5332_v53  ;;  %4041 = vmatpush3.xpose.msra.mxu1 %v2736_v10 }
 0x247   :  { %4011 = vmatprep.subr.mxu0 %v5568_v0  ;;  %4042 = vmatprep.subr.mxu1 %v5568_v0 }
 0x24a   :  { %4012 = vmatpush3.xpose.msra.mxu0 %v5340_v37  ;;  %4043 = vmatpush3.xpose.msra.mxu1 %v2743_v35 }
 0x24b   :  { %4013 = vmatprep.subr.mxu0 %v5568_v0  ;;  %4044 = vmatprep.subr.mxu1 %v5568_v0 }
 0x24e   :  { %4014 = vmatpush3.xpose.msra.mxu0 %v5360_v7  ;;  %4045 = vmatpush3.xpose.msra.mxu1 %v2750_v15 }
 0x24f   :  { %4046 = vmatprep.subr.mxu1 %v5568_v0  ;;  %4053 = vmatprep.subr.mxu0 %v5568_v0 }
 0x251   :  { %4016 = vmatmul.mubr.f32.vlgmr.msra.gmra.mxu0 %v5568_v0 }
 0x252   :  { %4047 = vmatpush3.xpose.msra.mxu1 %v2757_v34  ;;  %4054 = vmatpush3.xpose.msra.mxu0 %v5187_v17 }
 0x253   :  { %4048 = vmatprep.subr.mxu1 %v5568_v0  ;;  %4055 = vmatprep.subr.mxu0 %v5568_v0 }
 0x254   :  { %4085 = vmatprep.mubr.msk.f32.mxu0 %vm4201_vm0, %v5568_v0 }
 0x256   :  { %4049 = vmatpush3.xpose.msra.mxu1 %v2764_v57  ;;  %4056 = vmatpush3.xpose.msra.mxu0 %v5191_v21 }
 0x257   :  { %4057 = vmatprep.subr.mxu0 %v5568_v0  ;;  %4088 = vmatprep.subr.mxu1 %v5568_v0 }
 0x259   :  { %4051 = vmatmul.mubr.f32.vlgmr.msra.gmra.mxu1 %v4202_v44 }
 0x25a   :  { %4058 = vmatpush3.xpose.msra.mxu0 %v5195_v54  ;;  %4089 = vmatpush3.xpose.msra.mxu1 %v5182_v28 }
 0x25b   :  { %4059 = vmatprep.subr.mxu0 %v5568_v0  ;;  %4090 = vmatprep.subr.mxu1 %v5568_v0 }
 0x25c   :  { %4120 = vmatprep.mubr.msk.f32.mxu1 %vm4201_vm0, %v5568_v0 }
 0x25e   :  { %4060 = vmatpush3.xpose.msra.mxu0 %v5209_v19  ;;  %4091 = vmatpush3.xpose.msra.mxu1 %v5184_v30 }
 0x25f   :  { %4061 = vmatprep.subr.mxu0 %v5568_v0  ;;  %4092 = vmatprep.subr.mxu1 %v5568_v0 }
 0x262   :  { %4062 = vmatpush3.xpose.msra.mxu0 %v5217_v29  ;;  %4093 = vmatpush3.xpose.msra.mxu1 %v5180_v5 }
 0x263   :  { %4063 = vmatprep.subr.mxu0 %v5568_v0  ;;  %4094 = vmatprep.subr.mxu1 %v5568_v0 }
 0x266   :  { %4064 = vmatpush3.xpose.msra.mxu0 %v5234_v9  ;;  %4095 = vmatpush3.xpose.msra.mxu1 %v5197_v42 }
 0x267   :  { %4065 = vmatprep.subr.mxu0 %v5568_v0  ;;  %4096 = vmatprep.subr.mxu1 %v5568_v0 }
 0x26a   :  { %4066 = vmatpush3.xpose.msra.mxu0 %v5243_v50  ;;  %4097 = vmatpush3.xpose.msra.mxu1 %v5205_v48 }
 0x26b   :  { %4067 = vmatprep.subr.mxu0 %v5568_v0  ;;  %4098 = vmatprep.subr.mxu1 %v5568_v0 }
 0x26e   :  { %4068 = vmatpush3.xpose.msra.mxu0 %v5262_v60  ;;  %4099 = vmatpush3.xpose.msra.mxu1 %v5221_v49 }
 0x26f   :  { %4069 = vmatprep.subr.mxu0 %v5568_v0  ;;  %4100 = vmatprep.subr.mxu1 %v5568_v0 }
 0x272   :  { %4070 = vmatpush3.xpose.msra.mxu0 %v5271_v36  ;;  %4101 = vmatpush3.xpose.msra.mxu1 %v5229_v3 }
 0x273   :  { %4071 = vmatprep.subr.mxu0 %v5568_v0  ;;  %4102 = vmatprep.subr.mxu1 %v5568_v0 }
 0x276   :  { %4072 = vmatpush3.xpose.msra.mxu0 %v5290_v62  ;;  %4103 = vmatpush3.xpose.msra.mxu1 %v5248_v24 }
 0x277   :  { %4073 = vmatprep.subr.mxu0 %v5568_v0  ;;  %4104 = vmatprep.subr.mxu1 %v5568_v0 }
 0x27a   :  { %4074 = vmatpush3.xpose.msra.mxu0 %v5304_v39  ;;  %4105 = vmatpush3.xpose.msra.mxu1 %v5256_v25 }
 0x27b   :  { %4075 = vmatprep.subr.mxu0 %v5568_v0  ;;  %4106 = vmatprep.subr.mxu1 %v5568_v0 }
 0x27e   :  { %4076 = vmatpush3.xpose.msra.mxu0 %v5318_v59  ;;  %4107 = vmatpush3.xpose.msra.mxu1 %v5276_v33 }
 0x27f   :  { %4077 = vmatprep.subr.mxu0 %v5568_v0  ;;  %4108 = vmatprep.subr.mxu1 %v5568_v0 }
 0x282   :  { %4078 = vmatpush3.xpose.msra.mxu0 %v5327_v51  ;;  %4109 = vmatpush3.xpose.msra.mxu1 %v5284_v20 }
 0x283   :  { %4079 = vmatprep.subr.mxu0 %v5568_v0  ;;  %4110 = vmatprep.subr.mxu1 %v5568_v0 }
 0x286   :  { %4080 = vmatpush3.xpose.msra.mxu0 %v5346_v6  ;;  %4111 = vmatpush3.xpose.msra.mxu1 %v5298_v2 }
 0x287   :  { %4081 = vmatprep.subr.mxu0 %v5568_v0  ;;  %4112 = vmatprep.subr.mxu1 %v5568_v0 }
 0x28a   :  { %4082 = vmatpush3.xpose.msra.mxu0 %v5355_v11  ;;  %4113 = vmatpush3.xpose.msra.mxu1 %v5312_v16 }
 0x28b   :  { %4083 = vmatprep.subr.mxu0 %v5568_v0  ;;  %4114 = vmatprep.subr.mxu1 %v5568_v0 }
 0x28e   :  { %4084 = vmatpush3.xpose.msra.mxu0 %v5371_v43  ;;  %4115 = vmatpush3.xpose.msra.mxu1 %v5332_v53 }
 0x28f   :  { %4116 = vmatprep.subr.mxu1 %v5568_v0  ;;  %4123 = vmatprep.subr.mxu0 %v5568_v0 }
 0x291   :  { %4086 = vmatmul.mubr.f32.vlgmr.msra.gmra.mxu0 %v5568_v0 }
 0x292   :  { %4117 = vmatpush3.xpose.msra.mxu1 %v5340_v37  ;;  %4124 = vmatpush3.xpose.msra.mxu0 %v2657_v61 }
 0x293   :  { %4118 = vmatprep.subr.mxu1 %v5568_v0  ;;  %4125 = vmatprep.subr.mxu0 %v5568_v0 }
 0x294   :  { %4155 = vmatprep.mubr.msk.f32.mxu0 %vm4201_vm0, %v5568_v0 }
 0x296   :  { %4119 = vmatpush3.xpose.msra.mxu1 %v5360_v7  ;;  %4126 = vmatpush3.xpose.msra.mxu0 %v2664_v55 }
 0x297   :  { %4127 = vmatprep.subr.mxu0 %v5568_v0  ;;  %4158 = vmatprep.subr.mxu1 %v5568_v0 }
 0x299   :  { %4121 = vmatmul.mubr.f32.vlgmr.msra.gmra.mxu1 %v5568_v0 }
 0x29a   :  { %4128 = vmatpush3.xpose.msra.mxu0 %v2671_v58  ;;  %4159 = vmatpush3.xpose.msra.mxu1 %v5182_v28 }
 0x29b   :  { %4129 = vmatprep.subr.mxu0 %v5568_v0  ;;  %4160 = vmatprep.subr.mxu1 %v5568_v0 }
 0x29c   :  { %4190 = vmatprep.mubr.msk.f32.mxu1 %vm4201_vm0, %v5568_v0 }
 0x29e   :  { %4130 = vmatpush3.xpose.msra.mxu0 %v2678_v52  ;;  %4161 = vmatpush3.xpose.msra.mxu1 %v5184_v30 }
 0x29f   :  { %4131 = vmatprep.subr.mxu0 %v5568_v0  ;;  %4162 = vmatprep.subr.mxu1 %v5568_v0 }
 0x2a2   :  { %4132 = vmatpush3.xpose.msra.mxu0 %v2685_v26  ;;  %4163 = vmatpush3.xpose.msra.mxu1 %v5180_v5 }
 0x2a3   :  { %4133 = vmatprep.subr.mxu0 %v5568_v0  ;;  %4164 = vmatprep.subr.mxu1 %v5568_v0 }
 0x2a6   :  { %4134 = vmatpush3.xpose.msra.mxu0 %v2692_v14  ;;  %4165 = vmatpush3.xpose.msra.mxu1 %v5197_v42 }
 0x2a7   :  { %4135 = vmatprep.subr.mxu0 %v5568_v0  ;;  %4166 = vmatprep.subr.mxu1 %v5568_v0 }
 0x2aa   :  { %4136 = vmatpush3.xpose.msra.mxu0 %v2699_v47  ;;  %4167 = vmatpush3.xpose.msra.mxu1 %v5205_v48 }
 0x2ab   :  { %4137 = vmatprep.subr.mxu0 %v5568_v0  ;;  %4168 = vmatprep.subr.mxu1 %v5568_v0 }
 0x2ae   :  { %4138 = vmatpush3.xpose.msra.mxu0 %v2706_v31  ;;  %4169 = vmatpush3.xpose.msra.mxu1 %v5221_v49 }
 0x2af   :  { %4139 = vmatprep.subr.mxu0 %v5568_v0  ;;  %4170 = vmatprep.subr.mxu1 %v5568_v0 }
 0x2b2   :  { %4140 = vmatpush3.xpose.msra.mxu0 %v2713_v1  ;;  %4171 = vmatpush3.xpose.msra.mxu1 %v5229_v3 }
 0x2b3   :  { %4141 = vmatprep.subr.mxu0 %v5568_v0  ;;  %4172 = vmatprep.subr.mxu1 %v5568_v0 }
 0x2b6   :  { %4142 = vmatpush3.xpose.msra.mxu0 %v2720_v18  ;;  %4173 = vmatpush3.xpose.msra.mxu1 %v5248_v24 }
 0x2b7   :  { %4143 = vmatprep.subr.mxu0 %v5568_v0  ;;  %4174 = vmatprep.subr.mxu1 %v5568_v0 }
 0x2ba   :  { %4144 = vmatpush3.xpose.msra.mxu0 %v2727_v4  ;;  %4175 = vmatpush3.xpose.msra.mxu1 %v5256_v25 }
 0x2bb   :  { %4145 = vmatprep.subr.mxu0 %v5568_v0  ;;  %4176 = vmatprep.subr.mxu1 %v5568_v0 }
 0x2be   :  { %4146 = vmatpush3.xpose.msra.mxu0 %v2734_v63  ;;  %4177 = vmatpush3.xpose.msra.mxu1 %v5276_v33 }
 0x2bf   :  { %4147 = vmatprep.subr.mxu0 %v5568_v0  ;;  %4178 = vmatprep.subr.mxu1 %v5568_v0 }
 0x2c2   :  { %4148 = vmatpush3.xpose.msra.mxu0 %v2741_v27  ;;  %4179 = vmatpush3.xpose.msra.mxu1 %v5284_v20 }
 0x2c3   :  { %4149 = vmatprep.subr.mxu0 %v5568_v0  ;;  %4180 = vmatprep.subr.mxu1 %v5568_v0 }
 0x2c6   :  { %4150 = vmatpush3.xpose.msra.mxu0 %v2748_v40  ;;  %4181 = vmatpush3.xpose.msra.mxu1 %v5298_v2 }
 0x2c7   :  { %4151 = vmatprep.subr.mxu0 %v5568_v0  ;;  %4182 = vmatprep.subr.mxu1 %v5568_v0 }
 0x2ca   :  { %4152 = vmatpush3.xpose.msra.mxu0 %v2755_v41  ;;  %4183 = vmatpush3.xpose.msra.mxu1 %v5312_v16 }
 0x2cb   :  { %4153 = vmatprep.subr.mxu0 %v5568_v0  ;;  %4184 = vmatprep.subr.mxu1 %v5568_v0 }
 0x2ce   :  { %4154 = vmatpush3.xpose.msra.mxu0 %v2762_v45  ;;  %4185 = vmatpush3.xpose.msra.mxu1 %v5332_v53 }
 0x2cf   :  { %4186 = vmatprep.subr.mxu1 %v5568_v0 }
 0x2d1   :  { %4156 = vmatmul.mubr.f32.vlgmr.msra.gmra.mxu0 %v4202_v44 }
 0x2d2   :  { %4187 = vmatpush3.xpose.msra.mxu1 %v5340_v37 }
 0x2d3   :  { %4188 = vmatprep.subr.mxu1 %v5568_v0 }
 0x2d6   :  { %4189 = vmatpush3.xpose.msra.mxu1 %v5360_v7 }
 0x2d9   :  { %4191 = vmatmul.mubr.f32.vlgmr.msra.gmra.mxu1 %v4202_v44 }
 0x311   :  { %v2650_v5 = vpop.f32.mrf.mxu0 }
 0x313   :  { %v4017_v28 = vpop.f32.mrf.mxu0 }
 0x319   :  { %v2800_v30 = vpop.f32.mrf.mxu1 }
 0x31a   :  { %v2801_v17 = vadd.f32 %v2800_v30, %v2650_v5 }
 0x31b   :  { %v4052_v21 = vpop.f32.mrf.mxu1 }
 0x351   :  { %v2902_v54 = vpop.f32.mrf.mxu0 }
 0x352   :  { %v2903_v42 = vadd.f32 %v2902_v54, %v2801_v17 }
 0x353   :  { %v4087_v61 = vpop.f32.mrf.mxu0 }
 0x359   :  { %v2988_v55 = vpop.f32.mrf.mxu1 }
 0x35a   :  { %v2989_v29 = vadd.f32 %v2988_v55, %v2903_v42 }
 0x35b   :  { %v4122_v48 = vpop.f32.mrf.mxu1 }
 0x391   :  { %v3106_v19 = vpop.f32.mrf.mxu0 }
 0x392   :  { %v3107_v49 = vadd.f32 %v3106_v19, %v2989_v29 }
 0x393   :  { %v4157_v58 = vpop.f32.mrf.mxu0 }
 0x399   :  { %v3192_v52 = vpop.f32.mrf.mxu1 }
 0x39a   :  { %v3193_v0 = vadd.f32 %v3192_v52, %v3107_v49 }
 0x39b   :  { %v4192_v3 = vpop.f32.mrf.mxu1 }
 0x39c   :  { %3196 = vst [vmem:[%s5555_s4] sm:$0x1] %v3193_v0 }

</bundles_post_ra>
